<compile_context>
chip_gen: v7x
topology: tpu7x:2x2x1
jax: 0.10.0
libtpu: 0.0.40
codegen_flags: <defaults>
</compile_context>

<pallas_src>
import math

import jax
import jax.numpy as jnp
from jax import lax
from jax.experimental import pallas as pl
from jax.experimental.pallas import tpu as pltpu

# Problem sizes (from the PyTorch module / its example input)
N, C_IN, H, W = 5, 8, 32, 14
C_OUT, K = 7, 3
H_OUT, W_OUT = H + K - 1, W + K - 1        # 34, 16
M_OUT = H_OUT * W_OUT                      # 544  flattened output spatial per image
L = N * M_OUT                              # 2720 total lane width (batch folded into lanes)
MAXSHIFT = (K - 1) * W_OUT + (K - 1)       # 34   largest backward reach of a tap
L_IN = MAXSHIFT + L                        # 2754 zero-extended input lane width
NEG_SLOPE = -0.25


def convt_leaky_kernel(x_ref, w_ref, o_ref):
    # x_ref: (C_IN, L_IN)        zero-extended input, (n, h, w) flattened on lanes
    # w_ref: (K*K, C_OUT, C_IN)  per-tap weight matrices (scatter form, no flips)
    # o_ref: (C_OUT, L)          channel-major output; reshapes to NCHW in the wrapper
    acc = None
    for kh in range(K):                                   # static 3x3 unroll (9 taps)
        for kw in range(K):
            start = MAXSHIFT - (kh * W_OUT + kw)          # static int in [0, 34]
            x_slab = x_ref[:, start:start + L]            # (C_IN, L) shifted window
            z = jnp.dot(w_ref[kh * K + kw], x_slab,
                        preferred_element_type=jnp.float32)   # (C_OUT, L) on the MXU
            acc = z if acc is None else acc + z
    # leaky-relu-like select: max(y, y * -0.25) == where(y > 0, y, -0.25 * y)
    o_ref[...] = jnp.maximum(acc, acc * NEG_SLOPE).astype(o_ref.dtype)


@jax.jit
def conv_transpose_leaky(x_nchw, weight):
    """x_nchw: (N, C_IN, H, W) f32; weight: (C_IN, C_OUT, K, K) f32 (PyTorch layout)."""
    # Tiny input relayout (one fused XLA op, ~72 KiB -> ~88 KiB): zero-pad each image to
    # (H_OUT, W_OUT) at the tail, flatten (n, h, w) onto the lane axis, prepend MAXSHIFT
    # zero lanes so every tap shift in the kernel is a plain static backward slice.
    xb = jnp.pad(x_nchw, ((0, 0), (0, 0), (0, H_OUT - H), (0, W_OUT - W)))   # (N,C_IN,34,16)
    xb = jnp.transpose(xb, (1, 0, 2, 3)).reshape(C_IN, L)                     # (8, 2720)
    xb = jnp.pad(xb, ((0, 0), (MAXSHIFT, 0)))                                 # (8, 2754)

    # Per-tap weight matrices: w_mat[kh*K+kw, co, ci] = weight[ci, co, kh, kw]
    w_mat = jnp.transpose(weight, (2, 3, 1, 0)).reshape(K * K, C_OUT, C_IN)   # (9, 7, 8)

    out = pl.pallas_call(
        convt_leaky_kernel,
        out_shape=jax.ShapeDtypeStruct((C_OUT, L), x_nchw.dtype),
        grid=(1,),
        in_specs=[
            pl.BlockSpec((C_IN, L_IN), lambda i: (0, 0)),
            pl.BlockSpec((K * K, C_OUT, C_IN), lambda i: (0, 0, 0)),
        ],
        out_specs=pl.BlockSpec((C_OUT, L), lambda i: (0, 0)),
        compiler_params=pltpu.CompilerParams(
            dimension_semantics=("arbitrary",),
        ),
    )(xb, w_mat)

    # (C_OUT, N*M_OUT) -> (N, C_OUT, H_OUT, W_OUT): metadata reshape + tiny 76 KiB transpose.
    return jnp.transpose(out.reshape(C_OUT, N, H_OUT, W_OUT), (1, 0, 2, 3))


def reference(x_nchw, weight):
    """Pure-JAX reference: conv_transpose(stride=1, pad=0) then where(y>0, y, y*-0.25)."""
    x_nhwc = jnp.transpose(x_nchw, (0, 2, 3, 1))
    x_pad = jnp.pad(x_nhwc, ((0, 0), (K - 1, K - 1), (K - 1, K - 1), (0, 0)))
    w_flip = jnp.transpose(jnp.flip(weight, axis=(2, 3)), (2, 3, 0, 1))  # HWIO
    y = lax.conv_general_dilated(
        x_pad, w_flip, window_strides=(1, 1), padding="VALID",
        dimension_numbers=("NHWC", "HWIO", "NHWC"),
    )
    y = jnp.where(y > 0, y, y * NEG_SLOPE)
    return jnp.transpose(y, (0, 3, 1, 2))


if __name__ == "__main__":
    key = jax.random.PRNGKey(0)
    kx, kw = jax.random.split(key)
    x3 = jax.random.normal(kx, (N, C_IN, H, W), dtype=jnp.float32)
    # deterministic weight init (PyTorch ConvTranspose2d weight shape: (C_IN, C_OUT, K, K))
    fan_in = C_IN * K * K
    bound = 1.0 / math.sqrt(fan_in)
    weight = jax.random.uniform(kw, (C_IN, C_OUT, K, K), jnp.float32,
                                minval=-bound, maxval=bound)

    out = jax.block_until_ready(conv_transpose_leaky(x3, weight))
    ref = jax.block_until_ready(reference(x3, weight))

    assert out.shape == (N, C_OUT, H_OUT, W_OUT), out.shape
    assert jnp.allclose(out, ref, rtol=1e-4, atol=1e-4), "mismatch vs reference"
    print("KERNEL_OK")
</pallas_src>

<mosaic_0001>
module attributes {stable_mosaic.version = 11 : i64} {
  func.func @convt_leaky_kernel(%arg0: i32, %arg1: memref<8x2754xf32, #tpu.memory_space<vmem>>, %arg2: memref<9x7x8xf32, #tpu.memory_space<vmem>>, %arg3: memref<7x2720xf32, #tpu.memory_space<vmem>>) attributes {dimension_semantics = [#tpu.dimension_semantics<arbitrary>], iteration_bounds = array<i64: 1>, scalar_prefetch = 0 : i64, scratch_operands = 0 : i64, tpu.core_type = #tpu.core_type<tc>, window_params = [{pipeline_mode = #tpu.pipeline_mode<synchronous>, transform_indices = @transform_0, window_bounds = array<i64: 8, 2754>}, {pipeline_mode = #tpu.pipeline_mode<synchronous>, transform_indices = @transform_1, window_bounds = array<i64: 9, 7, 8>}, {pipeline_mode = #tpu.pipeline_mode<synchronous>, transform_indices = @transform_2, window_bounds = array<i64: 7, 2720>}]} {
    %c0 = arith.constant 0 : index
    %c34 = arith.constant 34 : index
    %0 = vector.load %arg1[%c0, %c34] : memref<8x2754xf32, #tpu.memory_space<vmem>>, vector<8x2720xf32>
    %c0_0 = arith.constant 0 : index
    %c0_1 = arith.constant 0 : index
    %c0_2 = arith.constant 0 : index
    %1 = vector.load %arg2[%c0_0, %c0_1, %c0_2] : memref<9x7x8xf32, #tpu.memory_space<vmem>>, vector<1x7x8xf32>
    %2 = vector.shape_cast %1 : vector<1x7x8xf32> to vector<7x8xf32>
    %cst = arith.constant dense<0.000000e+00> : vector<7x2720xf32>
    %3 = tpu.matmul %2, %0, %cst {dimension_numbers = #tpu.dot_dimension_numbers<[1], [0], [0], [1], [0, 0, 1, 1], [], []>} : vector<7x8xf32>, vector<8x2720xf32>, vector<7x2720xf32> -> vector<7x2720xf32>
    %c0_3 = arith.constant 0 : index
    %c33 = arith.constant 33 : index
    %4 = vector.load %arg1[%c0_3, %c33] : memref<8x2754xf32, #tpu.memory_space<vmem>>, vector<8x2720xf32>
    %c1 = arith.constant 1 : index
    %c0_4 = arith.constant 0 : index
    %c0_5 = arith.constant 0 : index
    %5 = vector.load %arg2[%c1, %c0_4, %c0_5] : memref<9x7x8xf32, #tpu.memory_space<vmem>>, vector<1x7x8xf32>
    %6 = vector.shape_cast %5 : vector<1x7x8xf32> to vector<7x8xf32>
    %cst_6 = arith.constant dense<0.000000e+00> : vector<7x2720xf32>
    %7 = tpu.matmul %6, %4, %cst_6 {dimension_numbers = #tpu.dot_dimension_numbers<[1], [0], [0], [1], [0, 0, 1, 1], [], []>} : vector<7x8xf32>, vector<8x2720xf32>, vector<7x2720xf32> -> vector<7x2720xf32>
    %8 = arith.addf %3, %7 : vector<7x2720xf32>
    %c0_7 = arith.constant 0 : index
    %c32 = arith.constant 32 : index
    %9 = vector.load %arg1[%c0_7, %c32] : memref<8x2754xf32, #tpu.memory_space<vmem>>, vector<8x2720xf32>
    %c2 = arith.constant 2 : index
    %c0_8 = arith.constant 0 : index
    %c0_9 = arith.constant 0 : index
    %10 = vector.load %arg2[%c2, %c0_8, %c0_9] : memref<9x7x8xf32, #tpu.memory_space<vmem>>, vector<1x7x8xf32>
    %11 = vector.shape_cast %10 : vector<1x7x8xf32> to vector<7x8xf32>
    %cst_10 = arith.constant dense<0.000000e+00> : vector<7x2720xf32>
    %12 = tpu.matmul %11, %9, %cst_10 {dimension_numbers = #tpu.dot_dimension_numbers<[1], [0], [0], [1], [0, 0, 1, 1], [], []>} : vector<7x8xf32>, vector<8x2720xf32>, vector<7x2720xf32> -> vector<7x2720xf32>
    %13 = arith.addf %8, %12 : vector<7x2720xf32>
    %c0_11 = arith.constant 0 : index
    %c18 = arith.constant 18 : index
    %14 = vector.load %arg1[%c0_11, %c18] : memref<8x2754xf32, #tpu.memory_space<vmem>>, vector<8x2720xf32>
    %c3 = arith.constant 3 : index
    %c0_12 = arith.constant 0 : index
    %c0_13 = arith.constant 0 : index
    %15 = vector.load %arg2[%c3, %c0_12, %c0_13] : memref<9x7x8xf32, #tpu.memory_space<vmem>>, vector<1x7x8xf32>
    %16 = vector.shape_cast %15 : vector<1x7x8xf32> to vector<7x8xf32>
    %cst_14 = arith.constant dense<0.000000e+00> : vector<7x2720xf32>
    %17 = tpu.matmul %16, %14, %cst_14 {dimension_numbers = #tpu.dot_dimension_numbers<[1], [0], [0], [1], [0, 0, 1, 1], [], []>} : vector<7x8xf32>, vector<8x2720xf32>, vector<7x2720xf32> -> vector<7x2720xf32>
    %18 = arith.addf %13, %17 : vector<7x2720xf32>
    %c0_15 = arith.constant 0 : index
    %c17 = arith.constant 17 : index
    %19 = vector.load %arg1[%c0_15, %c17] : memref<8x2754xf32, #tpu.memory_space<vmem>>, vector<8x2720xf32>
    %c4 = arith.constant 4 : index
    %c0_16 = arith.constant 0 : index
    %c0_17 = arith.constant 0 : index
    %20 = vector.load %arg2[%c4, %c0_16, %c0_17] : memref<9x7x8xf32, #tpu.memory_space<vmem>>, vector<1x7x8xf32>
    %21 = vector.shape_cast %20 : vector<1x7x8xf32> to vector<7x8xf32>
    %cst_18 = arith.constant dense<0.000000e+00> : vector<7x2720xf32>
    %22 = tpu.matmul %21, %19, %cst_18 {dimension_numbers = #tpu.dot_dimension_numbers<[1], [0], [0], [1], [0, 0, 1, 1], [], []>} : vector<7x8xf32>, vector<8x2720xf32>, vector<7x2720xf32> -> vector<7x2720xf32>
    %23 = arith.addf %18, %22 : vector<7x2720xf32>
    %c0_19 = arith.constant 0 : index
    %c16 = arith.constant 16 : index
    %24 = vector.load %arg1[%c0_19, %c16] : memref<8x2754xf32, #tpu.memory_space<vmem>>, vector<8x2720xf32>
    %c5 = arith.constant 5 : index
    %c0_20 = arith.constant 0 : index
    %c0_21 = arith.constant 0 : index
    %25 = vector.load %arg2[%c5, %c0_20, %c0_21] : memref<9x7x8xf32, #tpu.memory_space<vmem>>, vector<1x7x8xf32>
    %26 = vector.shape_cast %25 : vector<1x7x8xf32> to vector<7x8xf32>
    %cst_22 = arith.constant dense<0.000000e+00> : vector<7x2720xf32>
    %27 = tpu.matmul %26, %24, %cst_22 {dimension_numbers = #tpu.dot_dimension_numbers<[1], [0], [0], [1], [0, 0, 1, 1], [], []>} : vector<7x8xf32>, vector<8x2720xf32>, vector<7x2720xf32> -> vector<7x2720xf32>
    %28 = arith.addf %23, %27 : vector<7x2720xf32>
    %c0_23 = arith.constant 0 : index
    %c2_24 = arith.constant 2 : index
    %29 = vector.load %arg1[%c0_23, %c2_24] : memref<8x2754xf32, #tpu.memory_space<vmem>>, vector<8x2720xf32>
    %c6 = arith.constant 6 : index
    %c0_25 = arith.constant 0 : index
    %c0_26 = arith.constant 0 : index
    %30 = vector.load %arg2[%c6, %c0_25, %c0_26] : memref<9x7x8xf32, #tpu.memory_space<vmem>>, vector<1x7x8xf32>
    %31 = vector.shape_cast %30 : vector<1x7x8xf32> to vector<7x8xf32>
    %cst_27 = arith.constant dense<0.000000e+00> : vector<7x2720xf32>
    %32 = tpu.matmul %31, %29, %cst_27 {dimension_numbers = #tpu.dot_dimension_numbers<[1], [0], [0], [1], [0, 0, 1, 1], [], []>} : vector<7x8xf32>, vector<8x2720xf32>, vector<7x2720xf32> -> vector<7x2720xf32>
    %33 = arith.addf %28, %32 : vector<7x2720xf32>
    %c0_28 = arith.constant 0 : index
    %c1_29 = arith.constant 1 : index
    %34 = vector.load %arg1[%c0_28, %c1_29] : memref<8x2754xf32, #tpu.memory_space<vmem>>, vector<8x2720xf32>
    %c7 = arith.constant 7 : index
    %c0_30 = arith.constant 0 : index
    %c0_31 = arith.constant 0 : index
    %35 = vector.load %arg2[%c7, %c0_30, %c0_31] : memref<9x7x8xf32, #tpu.memory_space<vmem>>, vector<1x7x8xf32>
    %36 = vector.shape_cast %35 : vector<1x7x8xf32> to vector<7x8xf32>
    %cst_32 = arith.constant dense<0.000000e+00> : vector<7x2720xf32>
    %37 = tpu.matmul %36, %34, %cst_32 {dimension_numbers = #tpu.dot_dimension_numbers<[1], [0], [0], [1], [0, 0, 1, 1], [], []>} : vector<7x8xf32>, vector<8x2720xf32>, vector<7x2720xf32> -> vector<7x2720xf32>
    %38 = arith.addf %33, %37 : vector<7x2720xf32>
    %c0_33 = arith.constant 0 : index
    %c0_34 = arith.constant 0 : index
    %39 = vector.load %arg1[%c0_33, %c0_34] : memref<8x2754xf32, #tpu.memory_space<vmem>>, vector<8x2720xf32>
    %c8 = arith.constant 8 : index
    %c0_35 = arith.constant 0 : index
    %c0_36 = arith.constant 0 : index
    %40 = vector.load %arg2[%c8, %c0_35, %c0_36] : memref<9x7x8xf32, #tpu.memory_space<vmem>>, vector<1x7x8xf32>
    %41 = vector.shape_cast %40 : vector<1x7x8xf32> to vector<7x8xf32>
    %cst_37 = arith.constant dense<0.000000e+00> : vector<7x2720xf32>
    %42 = tpu.matmul %41, %39, %cst_37 {dimension_numbers = #tpu.dot_dimension_numbers<[1], [0], [0], [1], [0, 0, 1, 1], [], []>} : vector<7x8xf32>, vector<8x2720xf32>, vector<7x2720xf32> -> vector<7x2720xf32>
    %43 = arith.addf %38, %42 : vector<7x2720xf32>
    %cst_38 = arith.constant -2.500000e-01 : f32
    %44 = vector.broadcast %cst_38 : f32 to vector<7x2720xf32>
    %45 = arith.mulf %43, %44 : vector<7x2720xf32>
    %46 = arith.maximumf %43, %45 : vector<7x2720xf32>
    %c0_39 = arith.constant 0 : index
    %c0_40 = arith.constant 0 : index
    %47 = vector.load %arg3[%c0_39, %c0_40] : memref<7x2720xf32, #tpu.memory_space<vmem>>, vector<7x2720xf32>
    tpu.vector_store %arg3[%c0_39, %c0_40], %46 {strides = array<i32>} : memref<7x2720xf32, #tpu.memory_space<vmem>>, vector<7x2720xf32>,
    return
  }
  func.func @transform_0(%arg0: i32) -> (i32, i32) {
    %c0_i32 = arith.constant 0 : i32
    %c0_i32_0 = arith.constant 0 : i32
    %c0_i32_1 = arith.constant 0 : i32
    return %c0_i32, %c0_i32_0 : i32, i32
  }
  func.func @transform_1(%arg0: i32) -> (i32, i32, i32) {
    %c0_i32 = arith.constant 0 : i32
    %c0_i32_0 = arith.constant 0 : i32
    %c0_i32_1 = arith.constant 0 : i32
    %c0_i32_2 = arith.constant 0 : i32
    return %c0_i32, %c0_i32_0, %c0_i32_1 : i32, i32, i32
  }
  func.func @transform_2(%arg0: i32) -> (i32, i32) {
    %c0_i32 = arith.constant 0 : i32
    %c0_i32_0 = arith.constant 0 : i32
    %c0_i32_1 = arith.constant 0 : i32
    return %c0_i32, %c0_i32_0 : i32, i32
  }
}

</mosaic_0001>

<bundles_post_ra>
// kernel: conv_transpose_leaky.1
= control target key start
LH: loop header
LB: loop body
LE: loop exit
PB: predicated region body
PF: predicated region fallthrough
CT: control target
= control target key end

     0   :  { %v8372_v2 = vmov 0.0   ;;  %s8373_s13 = smov 95   ;;  %s8374_s30 = smov 94   ;;  %vm102_vm0 = vcmask 777216   ;;  %vm146_vm1 = vcmask 64512   ;;  %vm975_vm2 = vcmask 769024   ;;  %s9761_s0 = inlined_call_operand.vmem [shape: f32[8,2754], index: 0, kind: input, shape index: {}]   ;;  %s9762_s1 = inlined_call_operand.vmem [shape: f32[9,7,8], index: 1, kind: input, shape index: {}]   ;;  %s9763_s2 = inlined_call_operand.vmem [shape: f32[7,2720], index: 2, kind: output, shape index: {}]  }
   0x1   :  { %v8399_v0 = vld [vmem:[%s9761_s0 + $0x88] sm:$0xff]  ;;  %v8404_v1 = vld [vmem:[%s9761_s0 + $0x80] sm:$0xff]  ;;  %782 = vmatprep.mubr.f32.mxu0 %v8372_v2  ;;  %214 = vmatprep.mubr.f32.mxu1 %v8372_v2  ;;  %v8415_v3 = vld [vmem:[%s9761_s0 + $0x90] sm:$0xff]  ;;  %s8375_s26 = smov 96   ;;  %s8376_s3 = smov 110   ;;  %vm1849_vm3 = vcmask 785408  }
   0x2   :  { %92 = vrot.lane.b32.xlu0 %v8399_v0, %s8373_s13  ;;  %90 = vrot.lane.b32.xlu1 %v8404_v1, %s8373_s13  ;;  %v8420_v4 = vld [vmem:[%s9761_s0 + $0x8] sm:$0xff]  ;;  %v8429_v5 = vld [vmem:[%s9761_s0 + $0x10] sm:$0xff]  ;;  %s8377_s5 = smov 111   ;;  %s8378_s8 = smov 112   ;;  %vm2745_vm4 = vcmask 900096   ;;  %vm3641_vm5 = vcmask 908288  }
   0x3   :  { %v8434_v6 = vld [vmem:[%s9761_s0] sm:$0xff]  ;;  %v8448_v8 = vld [vmem:[%s9761_s0 + $0xa8] sm:$0xff]  ;;  %v8457_v9 = vld [vmem:[%s9761_s0 + $0x18] sm:$0xff]  ;;  %s8379_s11 = smov 126   ;;  %s8380_s27 = smov 127   ;;  %vm4537_vm6 = vcmask 916480  }
   0x4   :  { %v8443_v7 = vld [vmem:[%s9761_s0 + $0xa0] sm:$0xff]  ;;  %v8475_v11 = vld [vmem:[%s9761_s0 + $0x28] sm:$0xff]  ;;  %v8484_v12 = vld [vmem:[%s9761_s0 + $0x30] sm:$0xff]  ;;  %vm5433_vm7 = vcmask 1031168   ;;  %vm6329_vm8 = vcmask 1039360   ;;  %vm8052_vm9 = vcmask 260096  }
   0x5   :  { %v8462_v10 = vld [vmem:[%s9761_s0 + $0x20] sm:$0xff]  ;;  %v8497_v13 = vld [vmem:[%s9761_s0 + $0x38] sm:$0xff]  ;;  %v8511_v15 = vld [vmem:[%s9761_s0 + $0x48] sm:$0xff] }
   0x6   :  { %94 = vrot.lane.b32.xlu0 %v8415_v3, %s8373_s13  ;;  %60 = vrot.lane.b32.xlu1 %v8420_v4, %s8373_s13  ;;  %v8502_v14 = vld [vmem:[%s9761_s0 + $0x40] sm:$0xff]  ;;  %v8516_v16 = vld [vmem:[%s9761_s0 + $0x50] sm:$0xff] }
   0x7   :  { %v8529_v17 = vld [vmem:[%s9761_s0 + $0x68] sm:$0xff]  ;;  %v8538_v18 = vld [vmem:[%s9761_s0 + $0x70] sm:$0xff]  ;;  %v8543_v19 = vld [vmem:[%s9761_s0 + $0x60] sm:$0xff] }
   0x8   :  { %v8552_v20 = vld [vmem:[%s9761_s0 + $0x58] sm:$0xff]  ;;  %v8637_v28 = vld [vmem:[%s9762_s1 + $0x8] sm:$0x7f]  ;;  %v8688_v46 = vld [vmem:[%s9762_s1] sm:$0x7f] }
   0x9   :  { %v8573_v21 = vld [vmem:[%s9761_s0 + $0x78] sm:$0xff] }
   0xa   :  { %62 = vrot.lane.b32.xlu0 %v8429_v5, %s8373_s13  ;;  %58 = vrot.lane.b32.xlu1 %v8434_v6, %s8373_s13  ;;  %v8586_v22 = vld [vmem:[%s9761_s0 + $0x98] sm:$0xff] }
   0xe   :  { %98 = vrot.lane.b32.xlu0 %v8443_v7, %s8373_s13  ;;  %100 = vrot.lane.b32.xlu1 %v8448_v8, %s8373_s13 }
  0x12   :  { %64 = vrot.lane.b32.xlu0 %v8457_v9, %s8373_s13  ;;  %66 = vrot.lane.b32.xlu1 %v8462_v10, %s8373_s13 }
  0x16   :  { %933 = vrot.lane.b32.xlu0 %v8420_v4, %s8374_s30  ;;  %935 = vrot.lane.b32.xlu1 %v8429_v5, %s8374_s30 }
  0x1a   :  { %931 = vrot.lane.b32.xlu0 %v8434_v6, %s8374_s30  ;;  %68 = vrot.lane.b32.xlu1 %v8475_v11, %s8373_s13 }
  0x1e   :  { %70 = vrot.lane.b32.xlu0 %v8484_v12, %s8373_s13  ;;  %941 = vrot.lane.b32.xlu1 %v8475_v11, %s8374_s30 }
  0x22   :  { %943 = vrot.lane.b32.xlu0 %v8484_v12, %s8374_s30  ;;  %939 = vrot.lane.b32.xlu1 %v8462_v10, %s8374_s30 }
  0x26   :  { %72 = vrot.lane.b32.xlu0 %v8497_v13, %s8373_s13  ;;  %74 = vrot.lane.b32.xlu1 %v8502_v14, %s8373_s13 }
  0x2a   :  { %949 = vrot.lane.b32.xlu0 %v8511_v15, %s8374_s30  ;;  %951 = vrot.lane.b32.xlu1 %v8516_v16, %s8374_s30 }
  0x2e   :  { %947 = vrot.lane.b32.xlu0 %v8502_v14, %s8374_s30  ;;  %76 = vrot.lane.b32.xlu1 %v8511_v15, %s8373_s13 }
  0x32   :  { %78 = vrot.lane.b32.xlu0 %v8516_v16, %s8373_s13  ;;  %957 = vrot.lane.b32.xlu1 %v8529_v17, %s8374_s30 }
  0x36   :  { %959 = vrot.lane.b32.xlu0 %v8538_v18, %s8374_s30  ;;  %955 = vrot.lane.b32.xlu1 %v8543_v19, %s8374_s30 }
  0x3a   :  { %80 = vrot.lane.b32.xlu0 %v8552_v20, %s8373_s13  ;;  %82 = vrot.lane.b32.xlu1 %v8543_v19, %s8373_s13 }
  0x3e   :  { %965 = vrot.lane.b32.xlu0 %v8399_v0, %s8374_s30  ;;  %967 = vrot.lane.b32.xlu1 %v8415_v3, %s8374_s30 }
  0x42   :  { %963 = vrot.lane.b32.xlu0 %v8404_v1, %s8374_s30  ;;  %84 = vrot.lane.b32.xlu1 %v8529_v17, %s8373_s13 }
  0x46   :  { %86 = vrot.lane.b32.xlu0 %v8538_v18, %s8373_s13  ;;  %971 = vrot.lane.b32.xlu1 %v8443_v7, %s8374_s30 }
  0x4a   :  { %973 = vrot.lane.b32.xlu0 %v8448_v8, %s8374_s30  ;;  %88 = vrot.lane.b32.xlu1 %v8573_v21, %s8373_s13 }
  0x4e   :  { %1807 = vrot.lane.b32.xlu0 %v8420_v4, %s8375_s26  ;;  %1809 = vrot.lane.b32.xlu1 %v8429_v5, %s8375_s26 }
  0x52   :  { %1805 = vrot.lane.b32.xlu0 %v8434_v6, %s8375_s26  ;;  %96 = vrot.lane.b32.xlu1 %v8586_v22, %s8373_s13 }
  0x56   :  { %1815 = vrot.lane.b32.xlu0 %v8475_v11, %s8375_s26  ;;  %1817 = vrot.lane.b32.xlu1 %v8484_v12, %s8375_s26 }
  0x5a   :  { %1813 = vrot.lane.b32.xlu0 %v8462_v10, %s8375_s26  ;;  %937 = vrot.lane.b32.xlu1 %v8457_v9, %s8374_s30 }
  0x5e   :  { %1823 = vrot.lane.b32.xlu0 %v8511_v15, %s8375_s26  ;;  %1825 = vrot.lane.b32.xlu1 %v8516_v16, %s8375_s26 }
  0x62   :  { %1821 = vrot.lane.b32.xlu0 %v8502_v14, %s8375_s26  ;;  %945 = vrot.lane.b32.xlu1 %v8497_v13, %s8374_s30 }
  0x66   :  { %1831 = vrot.lane.b32.xlu0 %v8529_v17, %s8375_s26  ;;  %1833 = vrot.lane.b32.xlu1 %v8538_v18, %s8375_s26 }
  0x6a   :  { %1829 = vrot.lane.b32.xlu0 %v8543_v19, %s8375_s26  ;;  %953 = vrot.lane.b32.xlu1 %v8552_v20, %s8374_s30 }
  0x6e   :  { %1839 = vrot.lane.b32.xlu0 %v8399_v0, %s8375_s26  ;;  %1841 = vrot.lane.b32.xlu1 %v8415_v3, %s8375_s26 }
  0x72   :  { %1837 = vrot.lane.b32.xlu0 %v8404_v1, %s8375_s26  ;;  %961 = vrot.lane.b32.xlu1 %v8573_v21, %s8374_s30 }
  0x74   :  { %v93_v23 = vpop.permute.xlu0 %92  ;;  %v8624_v24 = vpop.permute.xlu1 %90 }
  0x75   :  { %v119_v29 = vsel %vm102_vm0, %v8624_v24, %v93_v23 }
  0x76   :  { %1845 = vrot.lane.b32.xlu0 %v8443_v7, %s8375_s26  ;;  %1847 = vrot.lane.b32.xlu1 %v8448_v8, %s8375_s26 }
  0x78   :  { %v8630_v25 = vpop.permute.xlu0 %94  ;;  %v61_v26 = vpop.permute.xlu1 %60 }
  0x79   :  { %v120_v27 = vsel %vm102_vm0, %v93_v23, %v8630_v25 }
  0x7a   :  { %718 = vmatprep.subr.mxu0 %v120_v27  ;;  %969 = vrot.lane.b32.xlu0 %v8586_v22, %s8374_s30 }
  0x7b   :  { %2703 = vrot.lane.b32.xlu1 %v8420_v4, %s8376_s3  ;;  %719 = vmatpush1.msra.mxu0 %v119_v29 }
  0x7c   :  { %v63_v30 = vpop.permute.xlu0 %62  ;;  %v59_v31 = vpop.permute.xlu1 %58  ;;  %8067 = vmatmul.mubr.msk.f32.vlgmr.msra.gmra.mrb[0].mxu0 %vm146_vm1, %v8637_v28 }
  0x7d   :  { %v104_v32 = vsel %vm102_vm0, %v61_v26, %v63_v30  ;;  %v103_v33 = vsel %vm102_vm0, %v59_v31, %v61_v26  ;;  %924 = vmatprep.mubr.f32.mxu0 %v8372_v2 }
  0x7e   :  { %150 = vmatprep.subr.mxu1 %v104_v32  ;;  %2705 = vrot.lane.b32.xlu0 %v8429_v5, %s8376_s3 }
  0x7f   :  { %2701 = vrot.lane.b32.xlu1 %v8434_v6, %s8376_s3  ;;  %151 = vmatpush1.msra.mxu1 %v103_v33 }
  0x80   :  { %v8654_v34 = vpop.permute.xlu0 %98  ;;  %v101_v35 = vpop.permute.xlu1 %100  ;;  %8059 = vmatmul.mubr.msk.f32.vlgmr.msra.gmra.mrb[0].mxu1 %vm146_vm1, %v8637_v28 }
  0x81   :  { %860 = vmatprep.subr.mxu0 %v101_v35  ;;  %v123_v36 = vsel %vm102_vm0, %v8654_v34, %v101_v35  ;;  %285 = vmatprep.mubr.f32.mxu1 %v8372_v2 }
  0x82   :  { %1811 = vrot.lane.b32.xlu0 %v8457_v9, %s8375_s26  ;;  %861 = vmatpush1.msra.mxu0 %v123_v36 }
  0x83   :  { %2711 = vrot.lane.b32.xlu1 %v8475_v11, %s8376_s3  ;;  %8069 = vmatmul.mubr.msk.f32.vlgmr.msra.gmra.mrb[2].mxu0 %vm146_vm1, %v8637_v28 }
  0x84   :  { %v65_v37 = vpop.permute.xlu0 %64  ;;  %v67_v38 = vpop.permute.xlu1 %66  ;;  %1086 = vmatprep.mubr.f32.mxu0 %v8372_v2 }
  0x85   :  { %v106_v39 = vsel %vm102_vm0, %v65_v37, %v67_v38  ;;  %v105_v40 = vsel %vm102_vm0, %v63_v30, %v65_v37 }
  0x86   :  { %2713 = vrot.lane.b32.xlu0 %v8484_v12, %s8376_s3  ;;  %221 = vmatprep.subr.mxu1 %v106_v39 }
  0x87   :  { %2709 = vrot.lane.b32.xlu1 %v8462_v10, %s8376_s3  ;;  %222 = vmatpush1.msra.mxu1 %v105_v40 }
  0x88   :  { %v934_v41 = vpop.permute.xlu0 %933  ;;  %v8674_v42 = vpop.permute.xlu1 %935  ;;  %8060 = vmatmul.mubr.msk.f32.vlgmr.msra.gmra.mrb[2].mxu1 %vm146_vm1, %v8637_v28 }
  0x89   :  { %v977_v43 = vsel %vm975_vm2, %v934_v41, %v8674_v42  ;;  %356 = vmatprep.mubr.f32.mxu1 %v8372_v2 }
  0x8a   :  { %1819 = vrot.lane.b32.xlu0 %v8497_v13, %s8375_s26  ;;  %1022 = vmatprep.subr.mxu0 %v977_v43 }
  0x8b   :  { %2719 = vrot.lane.b32.xlu1 %v8511_v15, %s8376_s3 }
  0x8c   :  { %v932_v44 = vpop.permute.xlu0 %931  ;;  %v69_v45 = vpop.permute.xlu1 %68 }
  0x8d   :  { %v976_v47 = vsel %vm975_vm2, %v932_v44, %v934_v41  ;;  %v107_v51 = vsel %vm102_vm0, %v67_v38, %v69_v45 }
  0x8e   :  { %2721 = vrot.lane.b32.xlu0 %v8516_v16, %s8376_s3  ;;  %1023 = vmatpush1.msra.mxu0 %v976_v47 }
  0x8f   :  { %2717 = vrot.lane.b32.xlu1 %v8502_v14, %s8376_s3  ;;  %8070 = vmatmul.mubr.msk.f32.vlgmr.msra.gmra.mrb[4].mxu0 %vm146_vm1, %v8688_v46 }
  0x90   :  { %v71_v48 = vpop.permute.xlu0 %70  ;;  %v942_v49 = vpop.permute.xlu1 %941  ;;  %1228 = vmatprep.mubr.f32.mxu0 %v8372_v2 }
  0x91   :  { %v108_v50 = vsel %vm102_vm0, %v69_v45, %v71_v48 }
  0x92   :  { %1827 = vrot.lane.b32.xlu0 %v8552_v20, %s8375_s26  ;;  %292 = vmatprep.subr.mxu1 %v108_v50 }
  0x93   :  { %2727 = vrot.lane.b32.xlu1 %v8529_v17, %s8376_s3  ;;  %293 = vmatpush1.msra.mxu1 %v107_v51 }
  0x94   :  { %v8704_v52 = vpop.permute.xlu0 %943  ;;  %v8706_v53 = vpop.permute.xlu1 %939  ;;  %8061 = vmatmul.mubr.msk.f32.vlgmr.msra.gmra.mrb[4].mxu1 %vm146_vm1, %v8637_v28 }
  0x95   :  { %v981_v54 = vsel %vm975_vm2, %v942_v49, %v8704_v52  ;;  %v980_v55 = vsel %vm975_vm2, %v8706_v53, %v942_v49  ;;  %427 = vmatprep.mubr.f32.mxu1 %v8372_v2 }
  0x96   :  { %2729 = vrot.lane.b32.xlu0 %v8538_v18, %s8376_s3  ;;  %1164 = vmatprep.subr.mxu0 %v981_v54 }
  0x97   :  { %2725 = vrot.lane.b32.xlu1 %v8543_v19, %s8376_s3  ;;  %1165 = vmatpush1.msra.mxu0 %v980_v55 }
  0x98   :  { %v73_v56 = vpop.permute.xlu0 %72  ;;  %v75_v57 = vpop.permute.xlu1 %74  ;;  %8072 = vmatmul.mubr.msk.f32.vlgmr.msra.gmra.mrb[6].mxu0 %vm146_vm1, %v8688_v46 }
  0x99   :  { %v110_v58 = vsel %vm102_vm0, %v73_v56, %v75_v57  ;;  %v109_v59 = vsel %vm102_vm0, %v71_v48, %v73_v56  ;;  %1370 = vmatprep.mubr.f32.mxu0 %v8372_v2 }
  0x9a   :  { %1835 = vrot.lane.b32.xlu0 %v8573_v21, %s8375_s26  ;;  %363 = vmatprep.subr.mxu1 %v110_v58 }
  0x9b   :  { %2735 = vrot.lane.b32.xlu1 %v8399_v0, %s8376_s3  ;;  %364 = vmatpush1.msra.mxu1 %v109_v59 }
  0x9c   :  { %v950_v60 = vpop.permute.xlu0 %949  ;;  %v8728_v61 = vpop.permute.xlu1 %951  ;;  %8062 = vmatmul.mubr.msk.f32.vlgmr.msra.gmra.mrb[6].mxu1 %vm146_vm1, %v8637_v28 }
  0x9d   :  { %v985_v62 = vsel %vm975_vm2, %v950_v60, %v8728_v61  ;;  %498 = vmatprep.mubr.f32.mxu1 %v8372_v2 }
  0x9e   :  { %2737 = vrot.lane.b32.xlu0 %v8415_v3, %s8376_s3  ;;  %1306 = vmatprep.subr.mxu0 %v985_v62 }
  0x9f   :  { %2733 = vrot.lane.b32.xlu1 %v8404_v1, %s8376_s3 }
  0xa0   :  { %v8739_v63 = vpop.permute.xlu0 %947  ;;  %v77_v23 = vpop.permute.xlu1 %76 }
  0xa1   :  { %v984_v26 = vsel %vm975_vm2, %v8739_v63, %v950_v60  ;;  %v111_v31 = vsel %vm102_vm0, %v75_v57, %v77_v23 }
  0xa2   :  { %1843 = vrot.lane.b32.xlu0 %v8586_v22, %s8375_s26  ;;  %1307 = vmatpush1.msra.mxu0 %v984_v26 }
  0xa3   :  { %2741 = vrot.lane.b32.xlu1 %v8443_v7, %s8376_s3  ;;  %8074 = vmatmul.mubr.msk.f32.vlgmr.msra.gmra.mrb[8].mxu0 %vm146_vm1, %v8688_v46 }
  0xa4   :  { %v79_v27 = vpop.permute.xlu0 %78  ;;  %v958_v29 = vpop.permute.xlu1 %957  ;;  %1512 = vmatprep.mubr.f32.mxu0 %v8372_v2 }
  0xa5   :  { %v112_v30 = vsel %vm102_vm0, %v77_v23, %v79_v27 }
  0xa6   :  { %2743 = vrot.lane.b32.xlu0 %v8448_v8, %s8376_s3  ;;  %434 = vmatprep.subr.mxu1 %v112_v30 }
  0xa7   :  { %2707 = vrot.lane.b32.xlu1 %v8457_v9, %s8376_s3  ;;  %435 = vmatpush1.msra.mxu1 %v111_v31  ;;  %v8844_v31 = vld [vmem:[%s9762_s1 + $0x10] sm:$0x7f] }
  0xa8   :  { %v8756_v32 = vpop.permute.xlu0 %959  ;;  %v8758_v33 = vpop.permute.xlu1 %955  ;;  %8063 = vmatmul.mubr.msk.f32.vlgmr.msra.gmra.mrb[8].mxu1 %vm146_vm1, %v8637_v28 }
  0xa9   :  { %v989_v35 = vsel %vm975_vm2, %v958_v29, %v8756_v32  ;;  %v988_v36 = vsel %vm975_vm2, %v8758_v33, %v958_v29  ;;  %569 = vmatprep.mubr.f32.mxu1 %v8372_v2 }
  0xaa   :  { %3599 = vrot.lane.b32.xlu0 %v8420_v4, %s8377_s5  ;;  %1448 = vmatprep.subr.mxu0 %v989_v35 }
  0xab   :  { %3601 = vrot.lane.b32.xlu1 %v8429_v5, %s8377_s5  ;;  %1449 = vmatpush1.msra.mxu0 %v988_v36 }
  0xac   :  { %v81_v37 = vpop.permute.xlu0 %80  ;;  %v83_v38 = vpop.permute.xlu1 %82  ;;  %8076 = vmatmul.mubr.msk.f32.vlgmr.msra.gmra.mrb[10].mxu0 %vm146_vm1, %v8688_v46 }
  0xad   :  { %v114_v39 = vsel %vm102_vm0, %v81_v37, %v83_v38  ;;  %v113_v40 = vsel %vm102_vm0, %v79_v27, %v81_v37  ;;  %1654 = vmatprep.mubr.f32.mxu0 %v8372_v2 }
  0xae   :  { %3597 = vrot.lane.b32.xlu0 %v8434_v6, %s8377_s5  ;;  %505 = vmatprep.subr.mxu1 %v114_v39 }
  0xaf   :  { %2715 = vrot.lane.b32.xlu1 %v8497_v13, %s8376_s3  ;;  %506 = vmatpush1.msra.mxu1 %v113_v40 }
  0xb0   :  { %v966_v41 = vpop.permute.xlu0 %965  ;;  %v8780_v43 = vpop.permute.xlu1 %967  ;;  %8064 = vmatmul.mubr.msk.f32.vlgmr.msra.gmra.mrb[10].mxu1 %vm146_vm1, %v8637_v28 }
  0xb1   :  { %v993_v44 = vsel %vm975_vm2, %v966_v41, %v8780_v43  ;;  %640 = vmatprep.mubr.f32.mxu1 %v8372_v2 }
  0xb2   :  { %3607 = vrot.lane.b32.xlu0 %v8475_v11, %s8377_s5  ;;  %1590 = vmatprep.subr.mxu0 %v993_v44 }
  0xb3   :  { %3609 = vrot.lane.b32.xlu1 %v8484_v12, %s8377_s5 }
  0xb4   :  { %v8791_v45 = vpop.permute.xlu0 %963  ;;  %v85_v47 = vpop.permute.xlu1 %84 }
  0xb5   :  { %v992_v48 = vsel %vm975_vm2, %v8791_v45, %v966_v41  ;;  %v115_v54 = vsel %vm102_vm0, %v83_v38, %v85_v47 }
  0xb6   :  { %3605 = vrot.lane.b32.xlu0 %v8462_v10, %s8377_s5  ;;  %1591 = vmatpush1.msra.mxu0 %v992_v48 }
  0xb7   :  { %2723 = vrot.lane.b32.xlu1 %v8552_v20, %s8376_s3  ;;  %8078 = vmatmul.mubr.msk.f32.vlgmr.msra.gmra.mrb[0].mxu0 %vm146_vm1, %v8688_v46 }
  0xb8   :  { %v87_v49 = vpop.permute.xlu0 %86  ;;  %v8801_v50 = vpop.permute.xlu1 %971  ;;  %1796 = vmatprep.mubr.f32.mxu0 %v8372_v2 }
  0xb9   :  { %v116_v51 = vsel %vm102_vm0, %v85_v47, %v87_v49 }
  0xba   :  { %3615 = vrot.lane.b32.xlu0 %v8511_v15, %s8377_s5  ;;  %576 = vmatprep.subr.mxu1 %v116_v51 }
  0xbb   :  { %3617 = vrot.lane.b32.xlu1 %v8516_v16, %s8377_s5  ;;  %577 = vmatpush1.msra.mxu1 %v115_v54 }
  0xbc   :  { %v974_v55 = vpop.permute.xlu0 %973  ;;  %v89_v56 = vpop.permute.xlu1 %88  ;;  %8065 = vmatmul.mubr.msk.f32.vlgmr.msra.gmra.mrb[12].mxu1 %vm146_vm1, %v8637_v28 }
  0xbd   :  { %1732 = vmatprep.subr.mxu0 %v974_v55  ;;  %v118_v57 = vsel %vm102_vm0, %v89_v56, %v8624_v24  ;;  %v996_v58 = vsel %vm975_vm2, %v8801_v50, %v974_v55  ;;  %v117_v59 = vsel %vm102_vm0, %v87_v49, %v89_v56  ;;  %711 = vmatprep.mubr.f32.mxu1 %v8372_v2 }
  0xbe   :  { %3613 = vrot.lane.b32.xlu0 %v8502_v14, %s8377_s5  ;;  %647 = vmatprep.subr.mxu1 %v118_v57 }
  0xbf   :  { %2731 = vrot.lane.b32.xlu1 %v8573_v21, %s8376_s3  ;;  %1733 = vmatpush1.msra.mxu0 %v996_v58 }
  0xc0   :  { %648 = vmatpush1.msra.mxu1 %v117_v59  ;;  %v1808_v60 = vpop.permute.xlu0 %1807  ;;  %v8822_v62 = vpop.permute.xlu1 %1809  ;;  %8080 = vmatmul.mubr.msk.f32.vlgmr.msra.gmra.mrb[2].mxu0 %vm146_vm1, %v8688_v46 }
  0xc1   :  { %v1851_v24 = vsel %vm1849_vm3, %v1808_v60, %v8822_v62  ;;  %8066 = vmatmul.mubr.msk.f32.vlgmr.msra.gmra.mrb[14].mxu1 %vm146_vm1, %v8637_v28  ;;  %1960 = vmatprep.mubr.f32.mxu0 %v8372_v2 }
  0xc2   :  { %3623 = vrot.lane.b32.xlu0 %v8529_v17, %s8377_s5  ;;  %1896 = vmatprep.subr.mxu0 %v1851_v24 }
  0xc3   :  { %3625 = vrot.lane.b32.xlu1 %v8538_v18, %s8377_s5  ;;  %853 = vmatprep.mubr.f32.mxu1 %v8372_v2 }
  0xc4   :  { %v1806_v23 = vpop.permute.xlu0 %1805  ;;  %v97_v26 = vpop.permute.xlu1 %96 }
  0xc5   :  { %v1850_v27 = vsel %vm1849_vm3, %v1806_v23, %v1808_v60  ;;  %v122_v29 = vsel %vm102_vm0, %v97_v26, %v8654_v34  ;;  %v121_v30 = vsel %vm102_vm0, %v8630_v25, %v97_v26 }
  0xc6   :  { %3621 = vrot.lane.b32.xlu0 %v8543_v19, %s8377_s5  ;;  %789 = vmatprep.subr.mxu1 %v122_v29 }
  0xc7   :  { %2739 = vrot.lane.b32.xlu1 %v8586_v22, %s8376_s3  ;;  %1897 = vmatpush1.msra.mxu0 %v1850_v27 }
  0xc8   :  { %790 = vmatpush1.msra.mxu1 %v121_v30  ;;  %v1816_v35 = vpop.permute.xlu0 %1815  ;;  %v8850_v36 = vpop.permute.xlu1 %1817  ;;  %8082 = vmatmul.mubr.msk.f32.vlgmr.msra.gmra.mrb[4].mxu0 %vm146_vm1, %v8844_v31 }
  0xc9   :  { %v1855_v25 = vsel %vm1849_vm3, %v1816_v35, %v8850_v36  ;;  %8068 = vmatmul.mubr.msk.f32.vlgmr.msra.gmra.mrb[16].mxu1 %vm146_vm1, %v8637_v28  ;;  %2102 = vmatprep.mubr.f32.mxu0 %v8372_v2 }
  0xca   :  { %3631 = vrot.lane.b32.xlu0 %v8399_v0, %s8377_s5  ;;  %2038 = vmatprep.subr.mxu0 %v1855_v25 }
  0xcb   :  { %3633 = vrot.lane.b32.xlu1 %v8415_v3, %s8377_s5  ;;  %1157 = vmatprep.mubr.f32.mxu1 %v8372_v2 }
  0xcc   :  { %v8864_v34 = vpop.permute.xlu0 %1813  ;;  %v938_v37 = vpop.permute.xlu1 %937 }
  0xcd   :  { %v979_v38 = vsel %vm975_vm2, %v938_v37, %v8706_v53  ;;  %v1854_v28 = vsel %vm1849_vm3, %v8864_v34, %v1816_v35  ;;  %v978_v39 = vsel %vm975_vm2, %v8674_v42, %v938_v37 }
  0xce   :  { %3629 = vrot.lane.b32.xlu0 %v8404_v1, %s8377_s5  ;;  %1093 = vmatprep.subr.mxu1 %v979_v38 }
  0xcf   :  { %3603 = vrot.lane.b32.xlu1 %v8457_v9, %s8377_s5  ;;  %2039 = vmatpush1.msra.mxu0 %v1854_v28  ;;  %v8988_v28 = vld [vmem:[%s9762_s1 + $0x18] sm:$0x7f] }
  0xd0   :  { %1094 = vmatpush1.msra.mxu1 %v978_v39  ;;  %v1824_v40 = vpop.permute.xlu0 %1823  ;;  %v8876_v41 = vpop.permute.xlu1 %1825  ;;  %8084 = vmatmul.mubr.msk.f32.vlgmr.msra.gmra.mrb[6].mxu0 %vm146_vm1, %v8844_v31 }
  0xd1   :  { %v1859_v53 = vsel %vm1849_vm3, %v1824_v40, %v8876_v41  ;;  %8071 = vmatmul.mubr.msk.f32.vlgmr.msra.gmra.mrb[2].mxu1 %vm146_vm1, %v8688_v46  ;;  %2244 = vmatprep.mubr.f32.mxu0 %v8372_v2 }
  0xd2   :  { %3637 = vrot.lane.b32.xlu0 %v8443_v7, %s8377_s5  ;;  %2180 = vmatprep.subr.mxu0 %v1859_v53 }
  0xd3   :  { %3639 = vrot.lane.b32.xlu1 %v8448_v8, %s8377_s5  ;;  %1299 = vmatprep.mubr.f32.mxu1 %v8372_v2 }
  0xd4   :  { %v8890_v42 = vpop.permute.xlu0 %1821  ;;  %v946_v44 = vpop.permute.xlu1 %945 }
  0xd5   :  { %v983_v47 = vsel %vm975_vm2, %v946_v44, %v8739_v63  ;;  %v1858_v48 = vsel %vm1849_vm3, %v8890_v42, %v1824_v40  ;;  %v982_v49 = vsel %vm975_vm2, %v8704_v52, %v946_v44 }
  0xd6   :  { %3611 = vrot.lane.b32.xlu0 %v8497_v13, %s8377_s5  ;;  %1235 = vmatprep.subr.mxu1 %v983_v47 }
  0xd7   :  { %4495 = vrot.lane.b32.xlu1 %v8420_v4, %s8378_s8  ;;  %2181 = vmatpush1.msra.mxu0 %v1858_v48 }
  0xd8   :  { %1236 = vmatpush1.msra.mxu1 %v982_v49  ;;  %v1832_v51 = vpop.permute.xlu0 %1831  ;;  %v8902_v54 = vpop.permute.xlu1 %1833  ;;  %8086 = vmatmul.mubr.msk.f32.vlgmr.msra.gmra.mrb[8].mxu0 %vm146_vm1, %v8844_v31 }
  0xd9   :  { %v1863_v63 = vsel %vm1849_vm3, %v1832_v51, %v8902_v54  ;;  %8073 = vmatmul.mubr.msk.f32.vlgmr.msra.gmra.mrb[6].mxu1 %vm146_vm1, %v8688_v46  ;;  %2386 = vmatprep.mubr.f32.mxu0 %v8372_v2 }
  0xda   :  { %4497 = vrot.lane.b32.xlu0 %v8429_v5, %s8378_s8  ;;  %2322 = vmatprep.subr.mxu0 %v1863_v63 }
  0xdb   :  { %4493 = vrot.lane.b32.xlu1 %v8434_v6, %s8378_s8  ;;  %1441 = vmatprep.mubr.f32.mxu1 %v8372_v2 }
  0xdc   :  { %v8916_v52 = vpop.permute.xlu0 %1829  ;;  %v954_v55 = vpop.permute.xlu1 %953 }
  0xdd   :  { %v987_v56 = vsel %vm975_vm2, %v954_v55, %v8758_v33  ;;  %v1862_v57 = vsel %vm1849_vm3, %v8916_v52, %v1832_v51  ;;  %v986_v58 = vsel %vm975_vm2, %v8728_v61, %v954_v55 }
  0xde   :  { %3619 = vrot.lane.b32.xlu0 %v8552_v20, %s8377_s5  ;;  %1377 = vmatprep.subr.mxu1 %v987_v56 }
  0xdf   :  { %4503 = vrot.lane.b32.xlu1 %v8475_v11, %s8378_s8  ;;  %2323 = vmatpush1.msra.mxu0 %v1862_v57 }
  0xe0   :  { %1378 = vmatpush1.msra.mxu1 %v986_v58  ;;  %v1840_v59 = vpop.permute.xlu0 %1839  ;;  %v8928_v60 = vpop.permute.xlu1 %1841  ;;  %8088 = vmatmul.mubr.msk.f32.vlgmr.msra.gmra.mrb[10].mxu0 %vm146_vm1, %v8844_v31 }
  0xe1   :  { %v1867_v33 = vsel %vm1849_vm3, %v1840_v59, %v8928_v60  ;;  %8075 = vmatmul.mubr.msk.f32.vlgmr.msra.gmra.mrb[10].mxu1 %vm146_vm1, %v8688_v46  ;;  %2528 = vmatprep.mubr.f32.mxu0 %v8372_v2 }
  0xe2   :  { %4505 = vrot.lane.b32.xlu0 %v8484_v12, %s8378_s8  ;;  %2464 = vmatprep.subr.mxu0 %v1867_v33 }
  0xe3   :  { %4501 = vrot.lane.b32.xlu1 %v8462_v10, %s8378_s8  ;;  %1583 = vmatprep.mubr.f32.mxu1 %v8372_v2 }
  0xe4   :  { %v8942_v61 = vpop.permute.xlu0 %1837  ;;  %v962_v24 = vpop.permute.xlu1 %961 }
  0xe5   :  { %v991_v23 = vsel %vm975_vm2, %v962_v24, %v8791_v45  ;;  %v1866_v26 = vsel %vm1849_vm3, %v8942_v61, %v1840_v59  ;;  %v990_v27 = vsel %vm975_vm2, %v8756_v32, %v962_v24 }
  0xe6   :  { %3627 = vrot.lane.b32.xlu0 %v8573_v21, %s8377_s5  ;;  %1519 = vmatprep.subr.mxu1 %v991_v23 }
  0xe7   :  { %4511 = vrot.lane.b32.xlu1 %v8511_v15, %s8378_s8  ;;  %2465 = vmatpush1.msra.mxu0 %v1866_v26 }
  0xe8   :  { %1520 = vmatpush1.msra.mxu1 %v990_v27  ;;  %v8954_v29 = vpop.permute.xlu0 %1845  ;;  %v1848_v30 = vpop.permute.xlu1 %1847  ;;  %8090 = vmatmul.mubr.msk.f32.vlgmr.msra.gmra.mrb[0].mxu0 %vm146_vm1, %v8844_v31 }
  0xe9   :  { %2606 = vmatprep.subr.mxu0 %v1848_v30  ;;  %v1870_v45 = vsel %vm1849_vm3, %v8954_v29, %v1848_v30  ;;  %8077 = vmatmul.mubr.msk.f32.vlgmr.msra.gmra.mrb[14].mxu1 %vm146_vm1, %v8688_v46 }
  0xea   :  { %4513 = vrot.lane.b32.xlu0 %v8516_v16, %s8378_s8  ;;  %2607 = vmatpush1.msra.mxu0 %v1870_v45 }
  0xeb   :  { %4509 = vrot.lane.b32.xlu1 %v8502_v14, %s8378_s8  ;;  %2670 = vmatprep.mubr.f32.mxu0 %v8372_v2 }
  0xec   :  { %v970_v32 = vpop.permute.xlu0 %969  ;;  %8092 = vmatmul.mubr.msk.f32.vlgmr.msra.gmra.mrb[2].mxu0 %vm146_vm1, %v8844_v31  ;;  %1725 = vmatprep.mubr.f32.mxu1 %v8372_v2 }
  0xed   :  { %v2704_v35 = vpop.permute.xlu1 %2703  ;;  %v995_v25 = vsel %vm975_vm2, %v970_v32, %v8801_v50  ;;  %v994_v37 = vsel %vm975_vm2, %v8780_v43, %v970_v32  ;;  %2856 = vmatprep.mubr.f32.mxu0 %v8372_v2  ;;  %v9144_v32 = vld [vmem:[%s9762_s1 + $0x20] sm:$0x7f] }
  0xee   :  { %3635 = vrot.lane.b32.xlu0 %v8586_v22, %s8377_s5  ;;  %1661 = vmatprep.subr.mxu1 %v995_v25 }
  0xef   :  { %4519 = vrot.lane.b32.xlu1 %v8529_v17, %s8378_s8  ;;  %1662 = vmatpush1.msra.mxu1 %v994_v37  ;;  %v9174_v37 = vld [vmem:[%s9761_s0 + $0x90] sm:$0xff] }
  0xf0   :  { %v8979_v38 = vpop.permute.xlu0 %2705  ;;  %8079 = vmatmul.mubr.msk.f32.vlgmr.msra.gmra.mrb[16].mxu1 %vm146_vm1, %v8688_v46 }
  0xf1   :  { %v2702_v50 = vpop.permute.xlu1 %2701  ;;  %v2747_v43 = vsel %vm2745_vm4, %v2704_v35, %v8979_v38  ;;  %2031 = vmatprep.mubr.f32.mxu1 %v8372_v2 }
  0xf2   :  { %v2746_v39 = vsel %vm2745_vm4, %v2702_v50, %v2704_v35  ;;  %4521 = vrot.lane.b32.xlu0 %v8538_v18, %s8378_s8  ;;  %2792 = vmatprep.subr.mxu0 %v2747_v43 }
  0xf3   :  { %4517 = vrot.lane.b32.xlu1 %v8543_v19, %s8378_s8  ;;  %2793 = vmatpush1.msra.mxu0 %v2746_v39 }
  0xf4   :  { %v1812_v46 = vpop.permute.xlu0 %1811  ;;  %8094 = vmatmul.mubr.msk.f32.vlgmr.msra.gmra.mrb[4].mxu0 %vm146_vm1, %v8988_v28 }
  0xf5   :  { %v2712_v40 = vpop.permute.xlu1 %2711  ;;  %v1853_v53 = vsel %vm1849_vm3, %v1812_v46, %v8864_v34  ;;  %v1852_v44 = vsel %vm1849_vm3, %v8822_v62, %v1812_v46  ;;  %2998 = vmatprep.mubr.f32.mxu0 %v8372_v2  ;;  %v9187_v46 = vld [vmem:[%s9761_s0 + $0x80] sm:$0xff] }
  0xf6   :  { %4499 = vrot.lane.b32.xlu0 %v8457_v9, %s8378_s8  ;;  %1967 = vmatprep.subr.mxu1 %v1853_v53 }
  0xf7   :  { %4527 = vrot.lane.b32.xlu1 %v8399_v0, %s8378_s8  ;;  %1968 = vmatpush1.msra.mxu1 %v1852_v44 }
  0xf8   :  { %v9007_v47 = vpop.permute.xlu0 %2713  ;;  %8083 = vmatmul.mubr.msk.f32.vlgmr.msra.gmra.mrb[2].mxu1 %vm146_vm1, %v8844_v31 }
  0xf9   :  { %v9011_v48 = vpop.permute.xlu1 %2709  ;;  %v2751_v62 = vsel %vm2745_vm4, %v2712_v40, %v9007_v47  ;;  %2173 = vmatprep.mubr.f32.mxu1 %v8372_v2 }
  0xfa   :  { %4529 = vrot.lane.b32.xlu0 %v8415_v3, %s8378_s8  ;;  %2934 = vmatprep.subr.mxu0 %v2751_v62  ;;  %v2750_v0 = vsel %vm2745_vm4, %v9011_v48, %v2712_v40 }
  0xfb   :  { %4525 = vrot.lane.b32.xlu1 %v8404_v1, %s8378_s8  ;;  %2935 = vmatpush1.msra.mxu0 %v2750_v0 }
  0xfc   :  { %v1820_v34 = vpop.permute.xlu0 %1819  ;;  %8096 = vmatmul.mubr.msk.f32.vlgmr.msra.gmra.mrb[6].mxu0 %vm146_vm1, %v8988_v28 }
  0xfd   :  { %v2720_v49 = vpop.permute.xlu1 %2719  ;;  %v1857_v51 = vsel %vm1849_vm3, %v1820_v34, %v8890_v42  ;;  %v1856_v63 = vsel %vm1849_vm3, %v8850_v36, %v1820_v34  ;;  %3140 = vmatprep.mubr.f32.mxu0 %v8372_v2 }
  0xfe   :  { %4507 = vrot.lane.b32.xlu0 %v8497_v13, %s8378_s8  ;;  %2109 = vmatprep.subr.mxu1 %v1857_v51 }
  0xff   :  { %4533 = vrot.lane.b32.xlu1 %v8443_v7, %s8378_s8  ;;  %2110 = vmatpush1.msra.mxu1 %v1856_v63  ;;  %v9232_v63 = vld [vmem:[%s9761_s0 + $0x8] sm:$0xff] }
 0x100   :  { %v9033_v1 = vpop.permute.xlu0 %2721  ;;  %8085 = vmatmul.mubr.msk.f32.vlgmr.msra.gmra.mrb[6].mxu1 %vm146_vm1, %v8844_v31 }
 0x101   :  { %v9037_v3 = vpop.permute.xlu1 %2717  ;;  %v2755_v36 = vsel %vm2745_vm4, %v2720_v49, %v9033_v1  ;;  %2315 = vmatprep.mubr.f32.mxu1 %v8372_v2 }
 0x102   :  { %4535 = vrot.lane.b32.xlu0 %v8448_v8, %s8378_s8  ;;  %3076 = vmatprep.subr.mxu0 %v2755_v36  ;;  %v2754_v7 = vsel %vm2745_vm4, %v9037_v3, %v2720_v49 }
 0x103   :  { %4515 = vrot.lane.b32.xlu1 %v8552_v20, %s8378_s8  ;;  %3077 = vmatpush1.msra.mxu0 %v2754_v7  ;;  %v9256_v7 = vld [vmem:[%s9761_s0] sm:$0xff] }
 0x104   :  { %v1828_v42 = vpop.permute.xlu0 %1827  ;;  %8098 = vmatmul.mubr.msk.f32.vlgmr.msra.gmra.mrb[8].mxu0 %vm146_vm1, %v8988_v28 }
 0x105   :  { %v2728_v55 = vpop.permute.xlu1 %2727  ;;  %v1861_v56 = vsel %vm1849_vm3, %v1828_v42, %v8916_v52  ;;  %v1860_v57 = vsel %vm1849_vm3, %v8876_v41, %v1828_v42  ;;  %3282 = vmatprep.mubr.f32.mxu0 %v8372_v2 }
 0x106   :  { %5391 = vrot.lane.b32.xlu0 %v8420_v4, %s8379_s11  ;;  %2251 = vmatprep.subr.mxu1 %v1861_v56 }
 0x107   :  { %5393 = vrot.lane.b32.xlu1 %v8429_v5, %s8379_s11  ;;  %2252 = vmatpush1.msra.mxu1 %v1860_v57 }
 0x108   :  { %v9059_v8 = vpop.permute.xlu0 %2729  ;;  %8087 = vmatmul.mubr.msk.f32.vlgmr.msra.gmra.mrb[10].mxu1 %vm146_vm1, %v8844_v31 }
 0x109   :  { %v9063_v52 = vpop.permute.xlu1 %2725  ;;  %v2759_v41 = vsel %vm2745_vm4, %v2728_v55, %v9059_v8  ;;  %2457 = vmatprep.mubr.f32.mxu1 %v8372_v2 }
 0x10a   :  { %5389 = vrot.lane.b32.xlu0 %v8434_v6, %s8379_s11  ;;  %3218 = vmatprep.subr.mxu0 %v2759_v41  ;;  %v2758_v4 = vsel %vm2745_vm4, %v9063_v52, %v2728_v55 }
 0x10b   :  { %4523 = vrot.lane.b32.xlu1 %v8573_v21, %s8378_s8  ;;  %3219 = vmatpush1.msra.mxu0 %v2758_v4 }
 0x10c   :  { %v1836_v5 = vpop.permute.xlu0 %1835  ;;  %8100 = vmatmul.mubr.msk.f32.vlgmr.msra.gmra.mrb[10].mxu0 %vm146_vm1, %v8988_v28 }
 0x10d   :  { %v2736_v58 = vpop.permute.xlu1 %2735  ;;  %v1865_v59 = vsel %vm1849_vm3, %v1836_v5, %v8942_v61  ;;  %v1864_v33 = vsel %vm1849_vm3, %v8902_v54, %v1836_v5  ;;  %3424 = vmatprep.mubr.f32.mxu0 %v8372_v2 }
 0x10e   :  { %5399 = vrot.lane.b32.xlu0 %v8475_v11, %s8379_s11  ;;  %2393 = vmatprep.subr.mxu1 %v1865_v59 }
 0x10f   :  { %5401 = vrot.lane.b32.xlu1 %v8484_v12, %s8379_s11  ;;  %2394 = vmatpush1.msra.mxu1 %v1864_v33 }
 0x110   :  { %v9085_v6 = vpop.permute.xlu0 %2737  ;;  %8089 = vmatmul.mubr.msk.f32.vlgmr.msra.gmra.mrb[14].mxu1 %vm146_vm1, %v8844_v31 }
 0x111   :  { %v9089_v24 = vpop.permute.xlu1 %2733  ;;  %v2763_v54 = vsel %vm2745_vm4, %v2736_v58, %v9085_v6  ;;  %2599 = vmatprep.mubr.f32.mxu1 %v8372_v2 }
 0x112   :  { %v2762_v11 = vsel %vm2745_vm4, %v9089_v24, %v2736_v58  ;;  %5397 = vrot.lane.b32.xlu0 %v8462_v10, %s8379_s11  ;;  %3360 = vmatprep.subr.mxu0 %v2763_v54  ;;  %v9297_v58 = vld [vmem:[%s9761_s0 + $0x20] sm:$0xff] }
 0x113   :  { %4531 = vrot.lane.b32.xlu1 %v8586_v22, %s8378_s8  ;;  %3361 = vmatpush1.msra.mxu0 %v2762_v11  ;;  %v9319_v11 = vld [vmem:[%s9761_s0 + $0x48] sm:$0xff] }
 0x114   :  { %v1844_v12 = vpop.permute.xlu0 %1843  ;;  %8102 = vmatmul.mubr.msk.f32.vlgmr.msra.gmra.mrb[0].mxu0 %vm146_vm1, %v8988_v28 }
 0x115   :  { %v1868_v61 = vsel %vm1849_vm3, %v8928_v60, %v1844_v12  ;;  %v9104_v23 = vpop.permute.xlu1 %2741  ;;  %v1869_v26 = vsel %vm1849_vm3, %v1844_v12, %v8954_v29  ;;  %3566 = vmatprep.mubr.f32.mxu0 %v8372_v2 }
 0x116   :  { %5407 = vrot.lane.b32.xlu0 %v8511_v15, %s8379_s11  ;;  %2535 = vmatprep.subr.mxu1 %v1869_v26  ;;  %v9335_v26 = vld [vmem:[%s9761_s0 + $0x50] sm:$0xff] }
 0x117   :  { %5409 = vrot.lane.b32.xlu1 %v8516_v16, %s8379_s11  ;;  %2536 = vmatpush1.msra.mxu1 %v1868_v61 }
 0x118   :  { %v2744_v10 = vpop.permute.xlu0 %2743  ;;  %8091 = vmatmul.mubr.msk.f32.vlgmr.msra.gmra.mrb[16].mxu1 %vm146_vm1, %v8844_v31 }
 0x119   :  { %v2766_v60 = vsel %vm2745_vm4, %v9104_v23, %v2744_v10  ;;  %v2708_v27 = vpop.permute.xlu1 %2707  ;;  %3502 = vmatprep.subr.mxu0 %v2744_v10  ;;  %2927 = vmatprep.mubr.f32.mxu1 %v8372_v2  ;;  %v9342_v10 = vld [vmem:[%s9761_s0 + $0x40] sm:$0xff] }
 0x11a   :  { %v2748_v29 = vsel %vm2745_vm4, %v8979_v38, %v2708_v27  ;;  %5405 = vrot.lane.b32.xlu0 %v8502_v14, %s8379_s11  ;;  %v2749_v15 = vsel %vm2745_vm4, %v2708_v27, %v9011_v48  ;;  %3503 = vmatpush1.msra.mxu0 %v2766_v60  ;;  %v9215_v48 = vld [vmem:[%s9761_s0 + $0xa8] sm:$0xff] }
 0x11b   :  { %5395 = vrot.lane.b32.xlu1 %v8457_v9, %s8379_s11  ;;  %2863 = vmatprep.subr.mxu1 %v2749_v15 }
 0x11c   :  { %2864 = vmatpush1.msra.mxu1 %v2748_v29  ;;  %v3600_v16 = vpop.permute.xlu0 %3599  ;;  %8104 = vmatmul.mubr.msk.f32.vlgmr.msra.gmra.mrb[2].mxu0 %vm146_vm1, %v8988_v28 }
 0x11d   :  { %v9128_v31 = vpop.permute.xlu1 %3601  ;;  %8095 = vmatmul.mubr.msk.f32.vlgmr.msra.gmra.mrb[2].mxu1 %vm146_vm1, %v8988_v28  ;;  %3752 = vmatprep.mubr.f32.mxu0 %v8372_v2 }
 0x11e   :  { %5415 = vrot.lane.b32.xlu0 %v8529_v17, %s8379_s11  ;;  %v3643_v9 = vsel %vm3641_vm5, %v3600_v16, %v9128_v31  ;;  %3069 = vmatprep.mubr.f32.mxu1 %v8372_v2 }
 0x11f   :  { %5417 = vrot.lane.b32.xlu1 %v8538_v18, %s8379_s11  ;;  %3688 = vmatprep.subr.mxu0 %v3643_v9 }
 0x120   :  { %v3598_v14 = vpop.permute.xlu0 %3597 }
 0x121   :  { %v3642_v30 = vsel %vm3641_vm5, %v3598_v14, %v3600_v16  ;;  %v2716_v45 = vpop.permute.xlu1 %2715  ;;  %v9357_v16 = vld [vmem:[%s9761_s0 + $0x38] sm:$0xff] }
 0x122   :  { %v2752_v17 = vsel %vm2745_vm4, %v9007_v47, %v2716_v45  ;;  %5413 = vrot.lane.b32.xlu0 %v8543_v19, %s8379_s11  ;;  %v2753_v35 = vsel %vm2745_vm4, %v2716_v45, %v9037_v3  ;;  %3689 = vmatpush1.msra.mxu0 %v3642_v30  ;;  %v9164_v19 = vld [vmem:[%s9761_s0 + $0x88] sm:$0xff]  ;;  %v9205_v47 = vld [vmem:[%s9761_s0 + $0xa0] sm:$0xff]  ;;  %v9246_v3 = vld [vmem:[%s9761_s0 + $0x10] sm:$0xff] }
 0x123   :  { %5403 = vrot.lane.b32.xlu1 %v8497_v13, %s8379_s11  ;;  %3005 = vmatprep.subr.mxu1 %v2753_v35  ;;  %v9377_v45 = vld [vmem:[%s9762_s1 + $0x28] sm:$0x7f]  ;;  %v9384_v35 = vld [vmem:[%s9761_s0 + $0x70] sm:$0xff] }
 0x124   :  { %3006 = vmatpush1.msra.mxu1 %v2752_v17  ;;  %v3608_v18 = vpop.permute.xlu0 %3607  ;;  %8106 = vmatmul.mubr.msk.f32.vlgmr.msra.gmra.mrb[4].mxu0 %vm146_vm1, %v9144_v32 }
 0x125   :  { %v9156_v25 = vpop.permute.xlu1 %3609  ;;  %8097 = vmatmul.mubr.msk.f32.vlgmr.msra.gmra.mrb[6].mxu1 %vm146_vm1, %v8988_v28  ;;  %3894 = vmatprep.mubr.f32.mxu0 %v8372_v2 }
 0x126   :  { %5423 = vrot.lane.b32.xlu0 %v9164_v19, %s8379_s11  ;;  %v3647_v13 = vsel %vm3641_vm5, %v3608_v18, %v9156_v25  ;;  %3211 = vmatprep.mubr.f32.mxu1 %v8372_v2 }
 0x127   :  { %5425 = vrot.lane.b32.xlu1 %v9174_v37, %s8379_s11  ;;  %3830 = vmatprep.subr.mxu0 %v3647_v13 }
 0x128   :  { %v9178_v38 = vpop.permute.xlu0 %3605 }
 0x129   :  { %v3646_v50 = vsel %vm3641_vm5, %v9178_v38, %v3608_v18  ;;  %v2724_v43 = vpop.permute.xlu1 %2723  ;;  %v9391_v18 = vld [vmem:[%s9761_s0 + $0x60] sm:$0xff] }
 0x12a   :  { %v2756_v39 = vsel %vm2745_vm4, %v9033_v1, %v2724_v43  ;;  %5421 = vrot.lane.b32.xlu0 %v9187_v46, %s8379_s11  ;;  %v2757_v40 = vsel %vm2745_vm4, %v2724_v43, %v9063_v52  ;;  %3831 = vmatpush1.msra.mxu0 %v3646_v50  ;;  %v9273_v52 = vld [vmem:[%s9761_s0 + $0x28] sm:$0xff]  ;;  %v9405_v43 = vld [vmem:[%s9761_s0 + $0x58] sm:$0xff] }
 0x12b   :  { %5411 = vrot.lane.b32.xlu1 %v8552_v20, %s8379_s11  ;;  %3147 = vmatprep.subr.mxu1 %v2757_v40 }
 0x12c   :  { %3148 = vmatpush1.msra.mxu1 %v2756_v39  ;;  %v3616_v53 = vpop.permute.xlu0 %3615  ;;  %8108 = vmatmul.mubr.msk.f32.vlgmr.msra.gmra.mrb[6].mxu0 %vm146_vm1, %v9144_v32 }
 0x12d   :  { %v9197_v44 = vpop.permute.xlu1 %3617  ;;  %8099 = vmatmul.mubr.msk.f32.vlgmr.msra.gmra.mrb[10].mxu1 %vm146_vm1, %v8988_v28  ;;  %4036 = vmatprep.mubr.f32.mxu0 %v8372_v2 }
 0x12e   :  { %5429 = vrot.lane.b32.xlu0 %v9205_v47, %s8379_s11  ;;  %v3651_v20 = vsel %vm3641_vm5, %v3616_v53, %v9197_v44  ;;  %3353 = vmatprep.mubr.f32.mxu1 %v8372_v2 }
 0x12f   :  { %5431 = vrot.lane.b32.xlu1 %v9215_v48, %s8379_s11  ;;  %3972 = vmatprep.subr.mxu0 %v3651_v20 }
 0x130   :  { %v9219_v62 = vpop.permute.xlu0 %3613 }
 0x131   :  { %v3650_v0 = vsel %vm3641_vm5, %v9219_v62, %v3616_v53  ;;  %v2732_v34 = vpop.permute.xlu1 %2731 }
 0x132   :  { %v2760_v49 = vsel %vm2745_vm4, %v9059_v8, %v2732_v34  ;;  %5419 = vrot.lane.b32.xlu0 %v8573_v21, %s8379_s11  ;;  %v2761_v51 = vsel %vm2745_vm4, %v2732_v34, %v9089_v24  ;;  %3973 = vmatpush1.msra.mxu0 %v3650_v0  ;;  %v9310_v24 = vld [vmem:[%s9761_s0 + $0x18] sm:$0xff] }
 0x133   :  { %6287 = vrot.lane.b32.xlu1 %v9232_v63, %s8380_s27  ;;  %3289 = vmatprep.subr.mxu1 %v2761_v51 }
 0x134   :  { %3290 = vmatpush1.msra.mxu1 %v2760_v49  ;;  %v3624_v1 = vpop.permute.xlu0 %3623  ;;  %8110 = vmatmul.mubr.msk.f32.vlgmr.msra.gmra.mrb[8].mxu0 %vm146_vm1, %v9144_v32  ;;  %v9433_v49 = vld [vmem:[%s9761_s0 + $0x78] sm:$0xff] }
 0x135   :  { %v9238_v21 = vpop.permute.xlu1 %3625  ;;  %8101 = vmatmul.mubr.msk.f32.vlgmr.msra.gmra.mrb[14].mxu1 %vm146_vm1, %v8988_v28  ;;  %4178 = vmatprep.mubr.f32.mxu0 %v8372_v2 }
 0x136   :  { %6289 = vrot.lane.b32.xlu0 %v9246_v3, %s8380_s27  ;;  %v3655_v36 = vsel %vm3641_vm5, %v3624_v1, %v9238_v21  ;;  %3495 = vmatprep.mubr.f32.mxu1 %v8372_v2 }
 0x137   :  { %6285 = vrot.lane.b32.xlu1 %v9256_v7, %s8380_s27  ;;  %4114 = vmatprep.subr.mxu0 %v3655_v36 }
 0x138   :  { %v9260_v42 = vpop.permute.xlu0 %3621 }
 0x139   :  { %v3654_v55 = vsel %vm3641_vm5, %v9260_v42, %v3624_v1  ;;  %v2740_v56 = vpop.permute.xlu1 %2739 }
 0x13a   :  { %v2764_v57 = vsel %vm2745_vm4, %v9085_v6, %v2740_v56  ;;  %5427 = vrot.lane.b32.xlu0 %v8586_v22, %s8379_s11  ;;  %v2765_v8 = vsel %vm2745_vm4, %v2740_v56, %v9104_v23  ;;  %4115 = vmatpush1.msra.mxu0 %v3654_v55  ;;  %v9287_v22 = vld [vmem:[%s9761_s0 + $0x30] sm:$0xff] }
 0x13b   :  { %6295 = vrot.lane.b32.xlu1 %v9273_v52, %s8380_s27  ;;  %3431 = vmatprep.subr.mxu1 %v2765_v8 }
 0x13c   :  { %3432 = vmatpush1.msra.mxu1 %v2764_v57  ;;  %v3632_v41 = vpop.permute.xlu0 %3631  ;;  %8112 = vmatmul.mubr.msk.f32.vlgmr.msra.gmra.mrb[10].mxu0 %vm146_vm1, %v9144_v32 }
 0x13d   :  { %v9279_v4 = vpop.permute.xlu1 %3633  ;;  %8103 = vmatmul.mubr.msk.f32.vlgmr.msra.gmra.mrb[16].mxu1 %vm146_vm1, %v8988_v28  ;;  %4320 = vmatprep.mubr.f32.mxu0 %v8372_v2 }
 0x13e   :  { %6297 = vrot.lane.b32.xlu0 %v9287_v22, %s8380_s27  ;;  %v3659_v5 = vsel %vm3641_vm5, %v3632_v41, %v9279_v4  ;;  %3823 = vmatprep.mubr.f32.mxu1 %v8372_v2 }
 0x13f   :  { %6293 = vrot.lane.b32.xlu1 %v9297_v58, %s8380_s27  ;;  %4256 = vmatprep.subr.mxu0 %v3659_v5 }
 0x140   :  { %v9301_v28 = vpop.permute.xlu0 %3629 }
 0x141   :  { %v3658_v59 = vsel %vm3641_vm5, %v9301_v28, %v3632_v41  ;;  %v3604_v33 = vpop.permute.xlu1 %3603 }
 0x142   :  { %v3644_v6 = vsel %vm3641_vm5, %v9128_v31, %v3604_v33  ;;  %6291 = vrot.lane.b32.xlu0 %v9310_v24, %s8380_s27  ;;  %v3645_v54 = vsel %vm3641_vm5, %v3604_v33, %v9178_v38  ;;  %4257 = vmatpush1.msra.mxu0 %v3658_v59  ;;  %v9364_v31 = vld [vmem:[%s9761_s0 + $0x68] sm:$0xff] }
 0x143   :  { %6303 = vrot.lane.b32.xlu1 %v9319_v11, %s8380_s27  ;;  %3759 = vmatprep.subr.mxu1 %v3645_v54 }
 0x144   :  { %3760 = vmatpush1.msra.mxu1 %v3644_v6  ;;  %v9323_v12 = vpop.permute.xlu0 %3637  ;;  %8114 = vmatmul.mubr.msk.f32.vlgmr.msra.gmra.mrb[0].mxu0 %vm146_vm1, %v9144_v32 }
 0x145   :  { %v3640_v61 = vpop.permute.xlu1 %3639  ;;  %8107 = vmatmul.mubr.msk.f32.vlgmr.msra.gmra.mrb[2].mxu1 %vm146_vm1, %v9144_v32  ;;  %4462 = vmatprep.mubr.f32.mxu0 %v8372_v2 }
 0x146   :  { %v3662_v23 = vsel %vm3641_vm5, %v9323_v12, %v3640_v61  ;;  %4398 = vmatprep.subr.mxu0 %v3640_v61  ;;  %6305 = vrot.lane.b32.xlu0 %v9335_v26, %s8380_s27 }
 0x147   :  { %6301 = vrot.lane.b32.xlu1 %v9342_v10, %s8380_s27  ;;  %4399 = vmatpush1.msra.mxu0 %v3662_v23 }
 0x148   :  { %v3612_v60 = vpop.permute.xlu0 %3611  ;;  %8116 = vmatmul.mubr.msk.f32.vlgmr.msra.gmra.mrb[2].mxu0 %vm146_vm1, %v9144_v32  ;;  %3965 = vmatprep.mubr.f32.mxu1 %v8372_v2 }
 0x149   :  { %v3648_v27 = vsel %vm3641_vm5, %v9156_v25, %v3612_v60  ;;  %v4496_v29 = vpop.permute.xlu1 %4495  ;;  %v3649_v15 = vsel %vm3641_vm5, %v3612_v60, %v9219_v62  ;;  %4648 = vmatprep.mubr.f32.mxu0 %v8372_v2 }
 0x14a   :  { %6299 = vrot.lane.b32.xlu0 %v9357_v16, %s8380_s27  ;;  %3901 = vmatprep.subr.mxu1 %v3649_v15 }
 0x14b   :  { %6311 = vrot.lane.b32.xlu1 %v9364_v31, %s8380_s27  ;;  %3902 = vmatpush1.msra.mxu1 %v3648_v27 }
 0x14c   :  { %v9368_v9 = vpop.permute.xlu0 %4497  ;;  %8109 = vmatmul.mubr.msk.f32.vlgmr.msra.gmra.mrb[6].mxu1 %vm146_vm1, %v9144_v32 }
 0x14d   :  { %v4494_v14 = vpop.permute.xlu1 %4493  ;;  %v4539_v30 = vsel %vm4537_vm6, %v4496_v29, %v9368_v9  ;;  %4107 = vmatprep.mubr.f32.mxu1 %v8372_v2 }
 0x14e   :  { %v4538_v17 = vsel %vm4537_vm6, %v4494_v14, %v4496_v29  ;;  %6313 = vrot.lane.b32.xlu0 %v9384_v35, %s8380_s27  ;;  %4584 = vmatprep.subr.mxu0 %v4539_v30 }
 0x14f   :  { %6309 = vrot.lane.b32.xlu1 %v9391_v18, %s8380_s27  ;;  %4585 = vmatpush1.msra.mxu0 %v4538_v17 }
 0x150   :  { %v3620_v25 = vpop.permute.xlu0 %3619  ;;  %8118 = vmatmul.mubr.msk.f32.vlgmr.msra.gmra.mrb[4].mxu0 %vm146_vm1, %v9377_v45 }
 0x151   :  { %v3652_v13 = vsel %vm3641_vm5, %v9197_v44, %v3620_v25  ;;  %v4504_v38 = vpop.permute.xlu1 %4503  ;;  %v3653_v50 = vsel %vm3641_vm5, %v3620_v25, %v9260_v42  ;;  %4790 = vmatprep.mubr.f32.mxu0 %v8372_v2  ;;  %v9449_v42 = vld [vmem:[%s9761_s0 + $0x98] sm:$0xff] }
 0x152   :  { %6307 = vrot.lane.b32.xlu0 %v9405_v43, %s8380_s27  ;;  %4043 = vmatprep.subr.mxu1 %v3653_v50 }
 0x153   :  { %6319 = vrot.lane.b32.xlu1 %v9164_v19, %s8380_s27  ;;  %4044 = vmatpush1.msra.mxu1 %v3652_v13  ;;  %v9474_v54 = vpop.f32.mrb[0].mxu1 }
 0x154   :  { %v9411_v39 = vpop.permute.xlu0 %4505  ;;  %8111 = vmatmul.mubr.msk.f32.vlgmr.msra.gmra.mrb[10].mxu1 %vm146_vm1, %v9144_v32  ;;  %v9478_v61 = vpop.f32.mrb[1].mxu1 }
 0x155   :  { %v4502_v40 = vpop.permute.xlu1 %4501  ;;  %v4543_v53 = vsel %vm4537_vm6, %v4504_v38, %v9411_v39  ;;  %4249 = vmatprep.mubr.f32.mxu1 %v8372_v2 }
 0x156   :  { %v4542_v44 = vsel %vm4537_vm6, %v4502_v40, %v4504_v38  ;;  %6321 = vrot.lane.b32.xlu0 %v9174_v37, %s8380_s27  ;;  %4726 = vmatprep.subr.mxu0 %v4543_v53 }
 0x157   :  { %6317 = vrot.lane.b32.xlu1 %v9187_v46, %s8380_s27  ;;  %4727 = vmatpush1.msra.mxu0 %v4542_v44 }
 0x158   :  { %v3628_v20 = vpop.permute.xlu0 %3627  ;;  %8120 = vmatmul.mubr.msk.f32.vlgmr.msra.gmra.mrb[6].mxu0 %vm146_vm1, %v9377_v45 }
 0x159   :  { %v3656_v62 = vsel %vm3641_vm5, %v9238_v21, %v3628_v20  ;;  %v4512_v0 = vpop.permute.xlu1 %4511  ;;  %v3657_v34 = vsel %vm3641_vm5, %v3628_v20, %v9301_v28  ;;  %4932 = vmatprep.mubr.f32.mxu0 %v8372_v2 }
 0x15a   :  { %6315 = vrot.lane.b32.xlu0 %v9433_v49, %s8380_s27  ;;  %4185 = vmatprep.subr.mxu1 %v3657_v34 }
 0x15b   :  { %6325 = vrot.lane.b32.xlu1 %v9205_v47, %s8380_s27  ;;  %4186 = vmatpush1.msra.mxu1 %v3656_v62 }
 0x15c   :  { %v4514_v51 = vpop.permute.xlu0 %4513  ;;  %8113 = vmatmul.mubr.msk.f32.vlgmr.msra.gmra.mrb[14].mxu1 %vm146_vm1, %v9144_v32 }
 0x15d   :  { %v4510_v1 = vpop.permute.xlu1 %4509  ;;  %v4547_v21 = vsel %vm4537_vm6, %v4512_v0, %v4514_v51  ;;  %4391 = vmatprep.mubr.f32.mxu1 %v8372_v2 }
 0x15e   :  { %v4546_v36 = vsel %vm4537_vm6, %v4510_v1, %v4512_v0  ;;  %6327 = vrot.lane.b32.xlu0 %v9215_v48, %s8380_s27  ;;  %4868 = vmatprep.subr.mxu0 %v4547_v21  ;;  %v9511_v0 = vld [vmem:[%s9762_s1 + $0x30] sm:$0x7f] }
 0x15f   :  { %6323 = vrot.lane.b32.xlu1 %v9449_v42, %s8380_s27  ;;  %4869 = vmatpush1.msra.mxu0 %v4546_v36 }
 0x160   :  { %v3636_v55 = vpop.permute.xlu0 %3635  ;;  %8122 = vmatmul.mubr.msk.f32.vlgmr.msra.gmra.mrb[8].mxu0 %vm146_vm1, %v9377_v45 }
 0x161   :  { %v3660_v56 = vsel %vm3641_vm5, %v9279_v4, %v3636_v55  ;;  %v4520_v57 = vpop.permute.xlu1 %4519  ;;  %v3661_v8 = vsel %vm3641_vm5, %v3636_v55, %v9323_v12  ;;  %5074 = vmatprep.mubr.f32.mxu0 %v8372_v2 }
 0x162   :  { %4327 = vmatprep.subr.mxu1 %v3661_v8 }
 0x163   :  { %4328 = vmatpush1.msra.mxu1 %v3660_v56 }
 0x164   :  { %v9460_v41 = vpop.permute.xlu0 %4521  ;;  %8115 = vmatmul.mubr.msk.f32.vlgmr.msra.gmra.mrb[16].mxu1 %vm146_vm1, %v9144_v32 }
 0x165   :  { %v4518_v5 = vpop.permute.xlu1 %4517  ;;  %v4551_v28 = vsel %vm4537_vm6, %v4520_v57, %v9460_v41  ;;  %4719 = vmatprep.mubr.f32.mxu1 %v8372_v2 }
 0x166   :  { %v4550_v4 = vsel %vm4537_vm6, %v4518_v5, %v4520_v57  ;;  %5010 = vmatprep.subr.mxu0 %v4551_v28 }
 0x167   :  { %5011 = vmatpush1.msra.mxu0 %v4550_v4  ;;  %v9482_v27 = vpop.f32.mrb[4].mxu1 }
 0x168   :  { %v4500_v59 = vpop.permute.xlu0 %4499  ;;  %8124 = vmatmul.mubr.msk.f32.vlgmr.msra.gmra.mrb[10].mxu0 %vm146_vm1, %v9377_v45  ;;  %v9485_v15 = vpop.f32.mrb[5].mxu1 }
 0x169   :  { %v4540_v33 = vsel %vm4537_vm6, %v9368_v9, %v4500_v59  ;;  %v4528_v6 = vpop.permute.xlu1 %4527  ;;  %v4541_v32 = vsel %vm4537_vm6, %v4500_v59, %v4502_v40  ;;  %5216 = vmatprep.mubr.f32.mxu0 %v8372_v2 }
 0x16a   :  { %4655 = vmatprep.subr.mxu1 %v4541_v32 }
 0x16b   :  { %4656 = vmatpush1.msra.mxu1 %v4540_v33 }
 0x16c   :  { %v4530_v12 = vpop.permute.xlu0 %4529  ;;  %8119 = vmatmul.mubr.msk.f32.vlgmr.msra.gmra.mrb[2].mxu1 %vm146_vm1, %v9377_v45 }
 0x16d   :  { %v4526_v23 = vpop.permute.xlu1 %4525  ;;  %v4555_v60 = vsel %vm4537_vm6, %v4528_v6, %v4530_v12  ;;  %4861 = vmatprep.mubr.f32.mxu1 %v8372_v2 }
 0x16e   :  { %v4554_v29 = vsel %vm4537_vm6, %v4526_v23, %v4528_v6  ;;  %5152 = vmatprep.subr.mxu0 %v4555_v60 }
 0x16f   :  { %5153 = vmatpush1.msra.mxu0 %v4554_v29 }
 0x170   :  { %v4508_v9 = vpop.permute.xlu0 %4507  ;;  %8126 = vmatmul.mubr.msk.f32.vlgmr.msra.gmra.mrb[0].mxu0 %vm146_vm1, %v9377_v45 }
 0x171   :  { %v4544_v14 = vsel %vm4537_vm6, %v9411_v39, %v4508_v9  ;;  %v4534_v30 = vpop.permute.xlu1 %4533  ;;  %v4545_v17 = vsel %vm4537_vm6, %v4508_v9, %v4510_v1  ;;  %5358 = vmatprep.mubr.f32.mxu0 %v8372_v2 }
 0x172   :  { %4797 = vmatprep.subr.mxu1 %v4545_v17 }
 0x173   :  { %4798 = vmatpush1.msra.mxu1 %v4544_v14 }
 0x174   :  { %v4536_v25 = vpop.permute.xlu0 %4535  ;;  %8121 = vmatmul.mubr.msk.f32.vlgmr.msra.gmra.mrb[6].mxu1 %vm146_vm1, %v9377_v45 }
 0x175   :  { %v4558_v13 = vsel %vm4537_vm6, %v4534_v30, %v4536_v25  ;;  %v4516_v38 = vpop.permute.xlu1 %4515  ;;  %5294 = vmatprep.subr.mxu0 %v4536_v25  ;;  %5003 = vmatprep.mubr.f32.mxu1 %v8372_v2 }
 0x176   :  { %v4548_v50 = vsel %vm4537_vm6, %v4514_v51, %v4516_v38  ;;  %v4549_v39 = vsel %vm4537_vm6, %v4516_v38, %v4518_v5  ;;  %5295 = vmatpush1.msra.mxu0 %v4558_v13 }
 0x177   :  { %4939 = vmatprep.subr.mxu1 %v4549_v39  ;;  %8128 = vmatmul.mubr.msk.f32.vlgmr.msra.gmra.mrb[2].mxu0 %vm146_vm1, %v9377_v45 }
 0x178   :  { %4940 = vmatpush1.msra.mxu1 %v4548_v50  ;;  %v5392_v40 = vpop.permute.xlu0 %5391  ;;  %5544 = vmatprep.mubr.f32.mxu0 %v8372_v2 }
 0x179   :  { %v5394_v53 = vpop.permute.xlu1 %5393  ;;  %8123 = vmatmul.mubr.msk.f32.vlgmr.msra.gmra.mrb[10].mxu1 %vm146_vm1, %v9377_v45 }
 0x17a   :  { %v5435_v44 = vsel %vm5433_vm7, %v5392_v40, %v5394_v53  ;;  %5145 = vmatprep.mubr.f32.mxu1 %v8372_v2 }
 0x17b   :  { %5480 = vmatprep.subr.mxu0 %v5435_v44  ;;  %v9506_v20 = vpop.f32.mrb[8].mxu1 }
 0x17c   :  { %v5390_v62 = vpop.permute.xlu0 %5389  ;;  %v9513_v34 = vpop.f32.mrb[9].mxu1 }
 0x17d   :  { %v5434_v51 = vsel %vm5433_vm7, %v5390_v62, %v5392_v40  ;;  %v4524_v1 = vpop.permute.xlu1 %4523 }
 0x17e   :  { %v4552_v21 = vsel %vm4537_vm6, %v9460_v41, %v4524_v1  ;;  %v4553_v36 = vsel %vm4537_vm6, %v4524_v1, %v4526_v23  ;;  %5481 = vmatpush1.msra.mxu0 %v5434_v51 }
 0x17f   :  { %5081 = vmatprep.subr.mxu1 %v4553_v36  ;;  %8130 = vmatmul.mubr.msk.f32.vlgmr.msra.gmra.mrb[4].mxu0 %vm146_vm1, %v9511_v0 }
 0x180   :  { %5082 = vmatpush1.msra.mxu1 %v4552_v21  ;;  %v5400_v55 = vpop.permute.xlu0 %5399  ;;  %5686 = vmatprep.mubr.f32.mxu0 %v8372_v2 }
 0x181   :  { %v5402_v56 = vpop.permute.xlu1 %5401  ;;  %8125 = vmatmul.mubr.msk.f32.vlgmr.msra.gmra.mrb[14].mxu1 %vm146_vm1, %v9377_v45 }
 0x182   :  { %v5439_v57 = vsel %vm5433_vm7, %v5400_v55, %v5402_v56  ;;  %5287 = vmatprep.mubr.f32.mxu1 %v8372_v2 }
 0x183   :  { %5622 = vmatprep.subr.mxu0 %v5439_v57 }
 0x184   :  { %v5398_v8 = vpop.permute.xlu0 %5397 }
 0x185   :  { %v5438_v41 = vsel %vm5433_vm7, %v5398_v8, %v5400_v55  ;;  %v4532_v5 = vpop.permute.xlu1 %4531 }
 0x186   :  { %v4556_v28 = vsel %vm4537_vm6, %v4530_v12, %v4532_v5  ;;  %v4557_v4 = vsel %vm4537_vm6, %v4532_v5, %v4534_v30  ;;  %5623 = vmatpush1.msra.mxu0 %v5438_v41 }
 0x187   :  { %5223 = vmatprep.subr.mxu1 %v4557_v4  ;;  %8132 = vmatmul.mubr.msk.f32.vlgmr.msra.gmra.mrb[6].mxu0 %vm146_vm1, %v9511_v0 }
 0x188   :  { %5224 = vmatpush1.msra.mxu1 %v4556_v28  ;;  %v5408_v59 = vpop.permute.xlu0 %5407  ;;  %5828 = vmatprep.mubr.f32.mxu0 %v8372_v2 }
 0x189   :  { %v5410_v33 = vpop.permute.xlu1 %5409  ;;  %8127 = vmatmul.mubr.msk.f32.vlgmr.msra.gmra.mrb[16].mxu1 %vm146_vm1, %v9377_v45 }
 0x18a   :  { %v5443_v6 = vsel %vm5433_vm7, %v5408_v59, %v5410_v33  ;;  %5615 = vmatprep.mubr.f32.mxu1 %v8372_v2 }
 0x18b   :  { %5764 = vmatprep.subr.mxu0 %v5443_v6  ;;  %v9581_v6 = vld [vmem:[%s9762_s1 + $0x38] sm:$0x7f] }
 0x18c   :  { %v5406_v32 = vpop.permute.xlu0 %5405 }
 0x18d   :  { %v5442_v12 = vsel %vm5433_vm7, %v5406_v32, %v5408_v59  ;;  %v5396_v23 = vpop.permute.xlu1 %5395 }
 0x18e   :  { %v5436_v60 = vsel %vm5433_vm7, %v5394_v53, %v5396_v23  ;;  %v5437_v29 = vsel %vm5433_vm7, %v5396_v23, %v5398_v8  ;;  %5765 = vmatpush1.msra.mxu0 %v5442_v12 }
 0x18f   :  { %5551 = vmatprep.subr.mxu1 %v5437_v29  ;;  %8134 = vmatmul.mubr.msk.f32.vlgmr.msra.gmra.mrb[8].mxu0 %vm146_vm1, %v9511_v0  ;;  %v9541_v9 = vpop.f32.mrb[12].mxu1 }
 0x190   :  { %5552 = vmatpush1.msra.mxu1 %v5436_v60  ;;  %v5416_v45 = vpop.permute.xlu0 %5415  ;;  %5970 = vmatprep.mubr.f32.mxu0 %v8372_v2  ;;  %v9544_v14 = vpop.f32.mrb[13].mxu1 }
 0x191   :  { %v5418_v30 = vpop.permute.xlu1 %5417  ;;  %8131 = vmatmul.mubr.msk.f32.vlgmr.msra.gmra.mrb[2].mxu1 %vm146_vm1, %v9511_v0 }
 0x192   :  { %v5447_v17 = vsel %vm5433_vm7, %v5416_v45, %v5418_v30  ;;  %5757 = vmatprep.mubr.f32.mxu1 %v8372_v2 }
 0x193   :  { %5906 = vmatprep.subr.mxu0 %v5447_v17 }
 0x194   :  { %v5414_v25 = vpop.permute.xlu0 %5413 }
 0x195   :  { %v5446_v13 = vsel %vm5433_vm7, %v5414_v25, %v5416_v45  ;;  %v5404_v38 = vpop.permute.xlu1 %5403 }
 0x196   :  { %v5440_v50 = vsel %vm5433_vm7, %v5402_v56, %v5404_v38  ;;  %v5441_v39 = vsel %vm5433_vm7, %v5404_v38, %v5406_v32  ;;  %5907 = vmatpush1.msra.mxu0 %v5446_v13 }
 0x197   :  { %5693 = vmatprep.subr.mxu1 %v5441_v39  ;;  %8136 = vmatmul.mubr.msk.f32.vlgmr.msra.gmra.mrb[10].mxu0 %vm146_vm1, %v9511_v0 }
 0x198   :  { %5694 = vmatpush1.msra.mxu1 %v5440_v50  ;;  %v5424_v40 = vpop.permute.xlu0 %5423  ;;  %6112 = vmatprep.mubr.f32.mxu0 %v8372_v2 }
 0x199   :  { %v5426_v53 = vpop.permute.xlu1 %5425  ;;  %8133 = vmatmul.mubr.msk.f32.vlgmr.msra.gmra.mrb[6].mxu1 %vm146_vm1, %v9511_v0 }
 0x19a   :  { %v5451_v44 = vsel %vm5433_vm7, %v5424_v40, %v5426_v53  ;;  %5899 = vmatprep.mubr.f32.mxu1 %v8372_v2 }
 0x19b   :  { %6048 = vmatprep.subr.mxu0 %v5451_v44 }
 0x19c   :  { %v5422_v62 = vpop.permute.xlu0 %5421 }
 0x19d   :  { %v5450_v51 = vsel %vm5433_vm7, %v5422_v62, %v5424_v40  ;;  %v5412_v1 = vpop.permute.xlu1 %5411 }
 0x19e   :  { %v5444_v21 = vsel %vm5433_vm7, %v5410_v33, %v5412_v1  ;;  %v5445_v36 = vsel %vm5433_vm7, %v5412_v1, %v5414_v25  ;;  %6049 = vmatpush1.msra.mxu0 %v5450_v51 }
 0x19f   :  { %5835 = vmatprep.subr.mxu1 %v5445_v36  ;;  %8138 = vmatmul.mubr.msk.f32.vlgmr.msra.gmra.mrb[0].mxu0 %vm146_vm1, %v9511_v0 }
 0x1a0   :  { %5836 = vmatpush1.msra.mxu1 %v5444_v21  ;;  %v5430_v55 = vpop.permute.xlu0 %5429  ;;  %6254 = vmatprep.mubr.f32.mxu0 %v8372_v2 }
 0x1a1   :  { %v5432_v56 = vpop.permute.xlu1 %5431  ;;  %8135 = vmatmul.mubr.msk.f32.vlgmr.msra.gmra.mrb[10].mxu1 %vm146_vm1, %v9511_v0 }
 0x1a2   :  { %v5454_v57 = vsel %vm5433_vm7, %v5430_v55, %v5432_v56  ;;  %6190 = vmatprep.subr.mxu0 %v5432_v56  ;;  %6041 = vmatprep.mubr.f32.mxu1 %v8372_v2 }
 0x1a3   :  { %6191 = vmatpush1.msra.mxu0 %v5454_v57 }
 0x1a4   :  { %v5420_v8 = vpop.permute.xlu0 %5419  ;;  %8140 = vmatmul.mubr.msk.f32.vlgmr.msra.gmra.mrb[2].mxu0 %vm146_vm1, %v9511_v0 }
 0x1a5   :  { %v5448_v41 = vsel %vm5433_vm7, %v5418_v30, %v5420_v8  ;;  %v6288_v5 = vpop.permute.xlu1 %6287  ;;  %v5449_v28 = vsel %vm5433_vm7, %v5420_v8, %v5422_v62  ;;  %6440 = vmatprep.mubr.f32.mxu0 %v8372_v2 }
 0x1a6   :  { %5977 = vmatprep.subr.mxu1 %v5449_v28 }
 0x1a7   :  { %5978 = vmatpush1.msra.mxu1 %v5448_v41 }
 0x1a8   :  { %v6290_v4 = vpop.permute.xlu0 %6289  ;;  %8137 = vmatmul.mubr.msk.f32.vlgmr.msra.gmra.mrb[14].mxu1 %vm146_vm1, %v9511_v0 }
 0x1a9   :  { %v6286_v59 = vpop.permute.xlu1 %6285  ;;  %v6331_v33 = vsel %vm6329_vm8, %v6288_v5, %v6290_v4  ;;  %6183 = vmatprep.mubr.f32.mxu1 %v8372_v2 }
 0x1aa   :  { %v6330_v32 = vsel %vm6329_vm8, %v6286_v59, %v6288_v5  ;;  %6376 = vmatprep.subr.mxu0 %v6331_v33 }
 0x1ab   :  { %6377 = vmatpush1.msra.mxu0 %v6330_v32 }
 0x1ac   :  { %v5428_v12 = vpop.permute.xlu0 %5427  ;;  %8142 = vmatmul.mubr.msk.f32.vlgmr.msra.gmra.mrb[4].mxu0 %vm146_vm1, %v9581_v6 }
 0x1ad   :  { %v5452_v23 = vsel %vm5433_vm7, %v5426_v53, %v5428_v12  ;;  %v6296_v60 = vpop.permute.xlu1 %6295  ;;  %v5453_v29 = vsel %vm5433_vm7, %v5428_v12, %v5430_v55  ;;  %6582 = vmatprep.mubr.f32.mxu0 %v8372_v2 }
 0x1ae   :  { %6119 = vmatprep.subr.mxu1 %v5453_v29 }
 0x1af   :  { %6120 = vmatpush1.msra.mxu1 %v5452_v23 }
 0x1b0   :  { %v6298_v45 = vpop.permute.xlu0 %6297  ;;  %8139 = vmatmul.mubr.msk.f32.vlgmr.msra.gmra.mrb[16].mxu1 %vm146_vm1, %v9511_v0 }
 0x1b1   :  { %v6294_v30 = vpop.permute.xlu1 %6293  ;;  %v6335_v17 = vsel %vm6329_vm8, %v6296_v60, %v6298_v45  ;;  %6511 = vmatprep.mubr.f32.mxu1 %v8372_v2 }
 0x1b2   :  { %v6334_v25 = vsel %vm6329_vm8, %v6294_v30, %v6296_v60  ;;  %6518 = vmatprep.subr.mxu0 %v6335_v17 }
 0x1b3   :  { %6519 = vmatpush1.msra.mxu0 %v6334_v25 }
 0x1b4   :  { %v6292_v13 = vpop.permute.xlu0 %6291  ;;  %8144 = vmatmul.mubr.msk.f32.vlgmr.msra.gmra.mrb[6].mxu0 %vm146_vm1, %v9581_v6 }
 0x1b5   :  { %v6332_v38 = vsel %vm6329_vm8, %v6290_v4, %v6292_v13  ;;  %v6304_v50 = vpop.permute.xlu1 %6303  ;;  %v6333_v39 = vsel %vm6329_vm8, %v6292_v13, %v6294_v30  ;;  %6724 = vmatprep.mubr.f32.mxu0 %v8372_v2 }
 0x1b6   :  { %6447 = vmatprep.subr.mxu1 %v6333_v39 }
 0x1b7   :  { %6448 = vmatpush1.msra.mxu1 %v6332_v38  ;;  %v8153_v38 = vld [vmem:[%s9762_s1 + $0x40] sm:$0x7f] }
 0x1b8   :  { %v6306_v0 = vpop.permute.xlu0 %6305  ;;  %8143 = vmatmul.mubr.msk.f32.vlgmr.msra.gmra.mrb[2].mxu1 %vm146_vm1, %v9581_v6 }
 0x1b9   :  { %v6302_v40 = vpop.permute.xlu1 %6301  ;;  %v6339_v53 = vsel %vm6329_vm8, %v6304_v50, %v6306_v0  ;;  %6653 = vmatprep.mubr.f32.mxu1 %v8372_v2 }
 0x1ba   :  { %v6338_v44 = vsel %vm6329_vm8, %v6302_v40, %v6304_v50  ;;  %6660 = vmatprep.subr.mxu0 %v6339_v53 }
 0x1bb   :  { %6661 = vmatpush1.msra.mxu0 %v6338_v44 }
 0x1bc   :  { %v6300_v62 = vpop.permute.xlu0 %6299  ;;  %8146 = vmatmul.mubr.msk.f32.vlgmr.msra.gmra.mrb[8].mxu0 %vm146_vm1, %v9581_v6 }
 0x1bd   :  { %v6336_v51 = vsel %vm6329_vm8, %v6298_v45, %v6300_v62  ;;  %v6312_v1 = vpop.permute.xlu1 %6311  ;;  %v6337_v21 = vsel %vm6329_vm8, %v6300_v62, %v6302_v40  ;;  %6866 = vmatprep.mubr.f32.mxu0 %v8372_v2 }
 0x1be   :  { %6589 = vmatprep.subr.mxu1 %v6337_v21 }
 0x1bf   :  { %6590 = vmatpush1.msra.mxu1 %v6336_v51 }
 0x1c0   :  { %v6314_v36 = vpop.permute.xlu0 %6313  ;;  %8145 = vmatmul.mubr.msk.f32.vlgmr.msra.gmra.mrb[6].mxu1 %vm146_vm1, %v9581_v6 }
 0x1c1   :  { %v6310_v55 = vpop.permute.xlu1 %6309  ;;  %v6343_v56 = vsel %vm6329_vm8, %v6312_v1, %v6314_v36  ;;  %6795 = vmatprep.mubr.f32.mxu1 %v8372_v2 }
 0x1c2   :  { %v6342_v57 = vsel %vm6329_vm8, %v6310_v55, %v6312_v1  ;;  %6802 = vmatprep.subr.mxu0 %v6343_v56 }
 0x1c3   :  { %6803 = vmatpush1.msra.mxu0 %v6342_v57 }
 0x1c4   :  { %v6308_v8 = vpop.permute.xlu0 %6307  ;;  %8148 = vmatmul.mubr.msk.f32.vlgmr.msra.gmra.mrb[10].mxu0 %vm146_vm1, %v9581_v6 }
 0x1c5   :  { %v6340_v41 = vsel %vm6329_vm8, %v6306_v0, %v6308_v8  ;;  %v6320_v5 = vpop.permute.xlu1 %6319  ;;  %v6341_v28 = vsel %vm6329_vm8, %v6308_v8, %v6310_v55  ;;  %7008 = vmatprep.mubr.f32.mxu0 %v8372_v2 }
 0x1c6   :  { %6731 = vmatprep.subr.mxu1 %v6341_v28 }
 0x1c7   :  { %6732 = vmatpush1.msra.mxu1 %v6340_v41 }
 0x1c8   :  { %v6322_v4 = vpop.permute.xlu0 %6321  ;;  %8147 = vmatmul.mubr.msk.f32.vlgmr.msra.gmra.mrb[10].mxu1 %vm146_vm1, %v9581_v6 }
 0x1c9   :  { %v6318_v59 = vpop.permute.xlu1 %6317  ;;  %v6347_v33 = vsel %vm6329_vm8, %v6320_v5, %v6322_v4  ;;  %6937 = vmatprep.mubr.f32.mxu1 %v8372_v2 }
 0x1ca   :  { %v6346_v32 = vsel %vm6329_vm8, %v6318_v59, %v6320_v5  ;;  %6944 = vmatprep.subr.mxu0 %v6347_v33 }
 0x1cb   :  { %6945 = vmatpush1.msra.mxu0 %v6346_v32 }
 0x1cc   :  { %v6316_v12 = vpop.permute.xlu0 %6315  ;;  %8150 = vmatmul.mubr.msk.f32.vlgmr.msra.gmra.mrb[0].mxu0 %vm146_vm1, %v9581_v6 }
 0x1cd   :  { %v6344_v23 = vsel %vm6329_vm8, %v6314_v36, %v6316_v12  ;;  %v6326_v60 = vpop.permute.xlu1 %6325  ;;  %v6345_v29 = vsel %vm6329_vm8, %v6316_v12, %v6318_v59  ;;  %7150 = vmatprep.mubr.f32.mxu0 %v8372_v2 }
 0x1ce   :  { %6873 = vmatprep.subr.mxu1 %v6345_v29 }
 0x1cf   :  { %6874 = vmatpush1.msra.mxu1 %v6344_v23 }
 0x1d0   :  { %v6328_v45 = vpop.permute.xlu0 %6327  ;;  %8149 = vmatmul.mubr.msk.f32.vlgmr.msra.gmra.mrb[14].mxu1 %vm146_vm1, %v9581_v6 }
 0x1d1   :  { %v6350_v30 = vsel %vm6329_vm8, %v6326_v60, %v6328_v45  ;;  %v6324_v17 = vpop.permute.xlu1 %6323  ;;  %7086 = vmatprep.subr.mxu0 %v6328_v45  ;;  %7079 = vmatprep.mubr.f32.mxu1 %v8372_v2 }
 0x1d2   :  { %v6348_v25 = vsel %vm6329_vm8, %v6322_v4, %v6324_v17  ;;  %v6349_v13 = vsel %vm6329_vm8, %v6324_v17, %v6326_v60  ;;  %7087 = vmatpush1.msra.mxu0 %v6350_v30 }
 0x1d3   :  { %7015 = vmatprep.subr.mxu1 %v6349_v13  ;;  %8152 = vmatmul.mubr.msk.f32.vlgmr.msra.gmra.mrb[2].mxu0 %vm146_vm1, %v9581_v6 }
 0x1d4   :  { %7016 = vmatpush1.msra.mxu1 %v6348_v25  ;;  %7184 = vmatprep.subr.mxu0 %v9232_v63 }
 0x1d5   :  { %8151 = vmatmul.mubr.msk.f32.vlgmr.msra.gmra.mrb[16].mxu1 %vm146_vm1, %v9581_v6  ;;  %7185 = vmatpush1.msra.mxu0 %v9256_v7 }
 0x1d6   :  { %7248 = vmatprep.mubr.f32.mxu0 %v8372_v2  ;;  %7255 = vmatprep.subr.mxu1 %v9310_v24 }
 0x1d7   :  { %8154 = vmatmul.mubr.msk.f32.vlgmr.msra.gmra.mrb[4].mxu0 %vm146_vm1, %v8153_v38  ;;  %7256 = vmatpush1.msra.mxu1 %v9246_v3 }
 0x1d8   :  { %7319 = vmatprep.mubr.f32.mxu1 %v8372_v2  ;;  %7326 = vmatprep.subr.mxu0 %v9273_v52 }
 0x1d9   :  { %8155 = vmatmul.mubr.msk.f32.vlgmr.msra.gmra.mrb[2].mxu1 %vm146_vm1, %v8153_v38  ;;  %7327 = vmatpush1.msra.mxu0 %v9297_v58 }
 0x1da   :  { %7390 = vmatprep.mubr.f32.mxu0 %v8372_v2  ;;  %7397 = vmatprep.subr.mxu1 %v9357_v16 }
 0x1db   :  { %8156 = vmatmul.mubr.msk.f32.vlgmr.msra.gmra.mrb[6].mxu0 %vm146_vm1, %v8153_v38  ;;  %7398 = vmatpush1.msra.mxu1 %v9287_v22 }
 0x1dc   :  { %7461 = vmatprep.mubr.f32.mxu1 %v8372_v2  ;;  %7468 = vmatprep.subr.mxu0 %v9319_v11 }
 0x1dd   :  { %8157 = vmatmul.mubr.msk.f32.vlgmr.msra.gmra.mrb[6].mxu1 %vm146_vm1, %v8153_v38  ;;  %7469 = vmatpush1.msra.mxu0 %v9342_v10 }
 0x1de   :  { %7532 = vmatprep.mubr.f32.mxu0 %v8372_v2  ;;  %7539 = vmatprep.subr.mxu1 %v9405_v43 }
 0x1df   :  { %8158 = vmatmul.mubr.msk.f32.vlgmr.msra.gmra.mrb[8].mxu0 %vm146_vm1, %v8153_v38  ;;  %7540 = vmatpush1.msra.mxu1 %v9335_v26 }
 0x1e0   :  { %7603 = vmatprep.mubr.f32.mxu1 %v8372_v2  ;;  %7610 = vmatprep.subr.mxu0 %v9364_v31 }
 0x1e1   :  { %8159 = vmatmul.mubr.msk.f32.vlgmr.msra.gmra.mrb[10].mxu1 %vm146_vm1, %v8153_v38  ;;  %7611 = vmatpush1.msra.mxu0 %v9391_v18 }
 0x1e2   :  { %7674 = vmatprep.mubr.f32.mxu0 %v8372_v2  ;;  %7681 = vmatprep.subr.mxu1 %v9433_v49 }
 0x1e3   :  { %8160 = vmatmul.mubr.msk.f32.vlgmr.msra.gmra.mrb[10].mxu0 %vm146_vm1, %v8153_v38  ;;  %7682 = vmatpush1.msra.mxu1 %v9384_v35 }
 0x1e4   :  { %7745 = vmatprep.mubr.f32.mxu1 %v8372_v2  ;;  %7752 = vmatprep.subr.mxu0 %v9164_v19 }
 0x1e5   :  { %8161 = vmatmul.mubr.msk.f32.vlgmr.msra.gmra.mrb[14].mxu1 %vm146_vm1, %v8153_v38  ;;  %7753 = vmatpush1.msra.mxu0 %v9187_v46 }
 0x1e6   :  { %7816 = vmatprep.mubr.f32.mxu0 %v8372_v2  ;;  %7823 = vmatprep.subr.mxu1 %v9449_v42 }
 0x1e7   :  { %8162 = vmatmul.mubr.msk.f32.vlgmr.msra.gmra.mrb[0].mxu0 %vm146_vm1, %v8153_v38  ;;  %7824 = vmatpush1.msra.mxu1 %v9174_v37 }
 0x1e8   :  { %7887 = vmatprep.mubr.f32.mxu1 %v8372_v2  ;;  %7894 = vmatprep.subr.mxu0 %v9215_v48 }
 0x1e9   :  { %8163 = vmatmul.mubr.msk.f32.vlgmr.msra.gmra.mrb[16].mxu1 %vm146_vm1, %v8153_v38  ;;  %7895 = vmatpush1.msra.mxu0 %v9205_v47 }
 0x1ea   :  { %7958 = vmatprep.mubr.f32.mxu0 %v8372_v2 }
 0x1eb   :  { %8164 = vmatmul.mubr.msk.f32.vlgmr.msra.gmra.mrb[2].mxu0 %vm146_vm1, %v8153_v38 }
 0x2aa   :  { %v7250_v19 = vpop.f32.mrb[4].mxu0 }
 0x2ab   :  { %v8165_v46 = vadd.f32 %v7250_v19, %v9474_v54  ;;  %v7252_v63 = vpop.f32.mrb[5].mxu0 }
 0x2ac   :  { %v8166_v3 = vadd.f32 %v7252_v63, %v9478_v61  ;;  %v7321_v7 = vpop.f32.mrb[2].mxu1 }
 0x2ad   :  { %v7987_v37 = vmul.f32 -0.25, %v8165_v46  ;;  %v7989_v52 = vmul.f32 -0.25, %v7321_v7  ;;  %v7323_v22 = vpop.f32.mrb[3].mxu1 }
 0x2ae   :  { %v7988_v58 = vmul.f32 -0.25, %v8166_v3  ;;  %v7990_v48 = vmul.f32 -0.25, %v7323_v22  ;;  %v7392_v24 = vpop.f32.mrb[6].mxu0 }
 0x2af   :  { %v8009_v11 = vmax.f32 %v8165_v46, %v7987_v37  ;;  %v8011_v26 = vmax.f32 %v7321_v7, %v7989_v52  ;;  %v8167_v47 = vadd.f32 %v7392_v24, %v9482_v27  ;;  %v7394_v2 = vpop.f32.mrb[7].mxu0 }
 0x2b0   :  { %v8010_v10 = vmax.f32 %v8166_v3, %v7988_v58  ;;  %v8012_v16 = vmax.f32 %v7323_v22, %v7990_v48  ;;  %v8168_v31 = vadd.f32 %v7394_v2, %v9485_v15  ;;  %v7463_v35 = vpop.f32.mrb[6].mxu1 }
 0x2b1   :  { %8031 = vst [vmem:[%s9763_s2] sm:$0x7f] %v8009_v11  ;;  %8033 = vst [vmem:[%s9763_s2 + $0x10] sm:$0x7f] %v8011_v26  ;;  %v7991_v18 = vmul.f32 -0.25, %v8167_v47  ;;  %v7993_v43 = vmul.f32 -0.25, %v7463_v35  ;;  %v7465_v49 = vpop.f32.mrb[7].mxu1 }
 0x2b2   :  { %8032 = vst [vmem:[%s9763_s2 + $0x8] sm:$0x7f] %v8010_v10  ;;  %8034 = vst [vmem:[%s9763_s2 + $0x18] sm:$0x7f] %v8012_v16  ;;  %v7992_v42 = vmul.f32 -0.25, %v8168_v31  ;;  %v7994_v54 = vmul.f32 -0.25, %v7465_v49 }
 0x2b3   :  { %v7534_v61 = vpop.f32.mrb[8].mxu0  ;;  %v8013_v27 = vmax.f32 %v8167_v47, %v7991_v18  ;;  %v8015_v15 = vmax.f32 %v7463_v35, %v7993_v43 }
 0x2b4   :  { %v8169_v6 = vadd.f32 %v7534_v61, %v9506_v20  ;;  %v7536_v50 = vpop.f32.mrb[9].mxu0  ;;  %v8014_v39 = vmax.f32 %v8168_v31, %v7992_v42  ;;  %v8016_v0 = vmax.f32 %v7465_v49, %v7994_v54  ;;  %v7605_v53 = vpop.f32.mrb[10].mxu1 }
 0x2b5   :  { %v8170_v40 = vadd.f32 %v7536_v50, %v9513_v34  ;;  %8035 = vst [vmem:[%s9763_s2 + $0x20] sm:$0x7f] %v8013_v27  ;;  %8037 = vst [vmem:[%s9763_s2 + $0x30] sm:$0x7f] %v8015_v15  ;;  %v7997_v62 = vmul.f32 -0.25, %v7605_v53  ;;  %v7607_v51 = vpop.f32.mrb[11].mxu1 }
 0x2b6   :  { %v7995_v44 = vmul.f32 -0.25, %v8169_v6  ;;  %8036 = vst [vmem:[%s9763_s2 + $0x28] sm:$0x7f] %v8014_v39  ;;  %8038 = vst [vmem:[%s9763_s2 + $0x38] sm:$0x7f] %v8016_v0  ;;  %v7998_v34 = vmul.f32 -0.25, %v7607_v51 }
 0x2b7   :  { %v7996_v20 = vmul.f32 -0.25, %v8170_v40  ;;  %v7676_v1 = vpop.f32.mrb[10].mxu0  ;;  %v8019_v36 = vmax.f32 %v7605_v53, %v7997_v62 }
 0x2b8   :  { %v8017_v21 = vmax.f32 %v8169_v6, %v7995_v44  ;;  %v8171_v55 = vadd.f32 %v7676_v1, %v9541_v9  ;;  %v7678_v56 = vpop.f32.mrb[11].mxu0  ;;  %v8020_v8 = vmax.f32 %v7607_v51, %v7998_v34  ;;  %v7747_v5 = vpop.f32.mrb[14].mxu1 }
 0x2b9   :  { %v8018_v57 = vmax.f32 %v8170_v40, %v7996_v20  ;;  %v8172_v41 = vadd.f32 %v7678_v56, %v9544_v14  ;;  %8041 = vst [vmem:[%s9763_s2 + $0x50] sm:$0x7f] %v8019_v36  ;;  %v8001_v4 = vmul.f32 -0.25, %v7747_v5  ;;  %v7749_v59 = vpop.f32.mrb[15].mxu1 }
 0x2ba   :  { %8039 = vst [vmem:[%s9763_s2 + $0x40] sm:$0x7f] %v8017_v21  ;;  %v7999_v28 = vmul.f32 -0.25, %v8171_v55  ;;  %8042 = vst [vmem:[%s9763_s2 + $0x58] sm:$0x7f] %v8020_v8  ;;  %v8002_v14 = vmul.f32 -0.25, %v7749_v59 }
 0x2bb   :  { %8040 = vst [vmem:[%s9763_s2 + $0x48] sm:$0x7f] %v8018_v57  ;;  %v8000_v9 = vmul.f32 -0.25, %v8172_v41  ;;  %v7818_v33 = vpop.f32.mrb[0].mxu0  ;;  %v8023_v12 = vmax.f32 %v7747_v5, %v8001_v4 }
 0x2bc   :  { %v8021_v32 = vmax.f32 %v8171_v55, %v7999_v28  ;;  %v8003_v23 = vmul.f32 -0.25, %v7818_v33  ;;  %v7820_v60 = vpop.f32.mrb[1].mxu0  ;;  %v8024_v45 = vmax.f32 %v7749_v59, %v8002_v14  ;;  %v7889_v17 = vpop.f32.mrb[16].mxu1 }
 0x2bd   :  { %v8022_v29 = vmax.f32 %v8172_v41, %v8000_v9  ;;  %v8004_v30 = vmul.f32 -0.25, %v7820_v60  ;;  %8045 = vst [vmem:[%s9763_s2 + $0x70] sm:$0x7f] %v8023_v12  ;;  %v8005_v13 = vmul.f32 -0.25, %v7889_v17  ;;  %v7891_v38 = vpop.f32.mrb[17].mxu1 }
 0x2be   :  { %8043 = vst [vmem:[%s9763_s2 + $0x60] sm:$0x7f] %v8021_v32  ;;  %v8025_v25 = vmax.f32 %v7818_v33, %v8003_v23  ;;  %8046 = vst [vmem:[%s9763_s2 + $0x78] sm:$0x7f] %v8024_v45  ;;  %v8006_v46 = vmul.f32 -0.25, %v7891_v38  ;;  %v7960_v63 = vpop.f32.mrb[2].mxu0 }
 0x2bf   :  { %8044 = vst [vmem:[%s9763_s2 + $0x68] sm:$0x7f] %v8022_v29  ;;  %v8026_v19 = vmax.f32 %v7820_v60, %v8004_v30  ;;  %v8027_v3 = vmax.f32 %v7889_v17, %v8005_v13  ;;  %v8007_v7 = vmul.f32 -0.25, %v7960_v63  ;;  %v7962_v37 = vpop.f32.mrb[3].mxu0 }
 0x2c0   :  { %8047 = vst [vmem:[%s9763_s2 + $0x80] sm:$0x7f] %v8025_v25  ;;  %v8028_v52 = vmax.f32 %v7891_v38, %v8006_v46  ;;  %v8008_v22 = vmul.f32 -0.25, %v7962_v37 }
 0x2c1   :  { %8048 = vst [vmem:[%s9763_s2 + $0x88] sm:$0x7f] %v8026_v19  ;;  %8049 = vst [vmem:[%s9763_s2 + $0x90] sm:$0x7f] %v8027_v3  ;;  %v8029_v58 = vmax.f32 %v7960_v63, %v8007_v7 }
 0x2c2   :  { %8050 = vst [vmem:[%s9763_s2 + $0x98] sm:$0x7f] %v8028_v52  ;;  %v8030_v48 = vmax.f32 %v7962_v37, %v8008_v22 }
 0x2c3   :  { %8051 = vst [vmem:[%s9763_s2 + $0xa0] sm:$0x7f] %v8029_v58 }
 0x2c4   :  { %8053 = vst.msk [vmem:[%s9763_s2 + $0xa8] sm:$0x7f] %vm8052_vm9, %v8030_v48 }

</bundles_post_ra>
